<compile_context>
chip_gen: v6e
topology: v6e:2x2x1
jax: 0.10.0
libtpu: 0.0.40
codegen_flags: <defaults>
</compile_context>

<pallas_src>
import functools

import jax
import jax.numpy as jnp
import numpy as np
from jax import lax
from jax.experimental import pallas as pl
from jax.experimental.pallas import tpu as pltpu


def _round_up(x, m):
    return (x + m - 1) // m * m


# ------------------------------ layout / constants -----------------------------

def make_rc(n, h, w):
    """Constants for one resolution of the zero-halo, spatially flattened layout."""
    hp, wp = h + 2, w + 2
    L = n * hp * wp
    lpad = _round_up(L, 128)
    reach = wp + 1                          # max |tap offset| = (W+2)+1
    store = 128                             # lane offset of the flat data inside act scratch
    lx = _round_up(store + lpad + reach, 128)
    offs = tuple(store - reach + dy * wp + dx for dy in range(3) for dx in range(3))
    return dict(N=n, H=h, W=w, hp=hp, wp=wp, L=L, Lpad=lpad, store=store, Lx=lx,
                offs=offs)


def to_halo(x_cnhw, rc):
    """(C, N, H, W) f32 -> zero-halo flat (C, Lpad) bf16."""
    c = x_cnhw.shape[0]
    xf = jnp.pad(x_cnhw, ((0, 0), (0, 0), (1, 1), (1, 1))).reshape(c, rc["L"])
    xf = jnp.pad(xf, ((0, 0), (0, rc["Lpad"] - rc["L"])))
    return xf.astype(jnp.bfloat16)


def from_halo(y_flat, c_keep, rc):
    """(Cp, Lpad) -> (c_keep, N, H, W), dropping halo/pad positions."""
    y = y_flat[:c_keep, :rc["L"]].reshape(c_keep, rc["N"], rc["hp"], rc["wp"])
    return y[:, :, 1:rc["H"] + 1, 1:rc["W"] + 1]


def make_mask(rc):
    """(1, Lpad) f32: 1.0 at interior flat positions, 0 at halo/pad positions."""
    msk = np.zeros((rc["N"], rc["hp"], rc["wp"]), np.float32)
    msk[:, 1:rc["H"] + 1, 1:rc["W"] + 1] = 1.0
    out = np.zeros((1, rc["Lpad"]), np.float32)
    out[0, :rc["L"]] = msk.reshape(-1)
    return jnp.asarray(out)


def make_subsample(rc_hi, rc_lo):
    """(Lpad_hi, Lpad_lo) bf16 0/1 matrix: stride-2 subsample + re-halo (exact gather)."""
    s = np.zeros((rc_hi["Lpad"], rc_lo["Lpad"]), np.float32)
    for n in range(rc_lo["N"]):
        for ho in range(1, rc_lo["H"] + 1):
            for wo in range(1, rc_lo["W"] + 1):
                l_lo = (n * rc_lo["hp"] + ho) * rc_lo["wp"] + wo
                l_hi = (n * rc_hi["hp"] + 2 * ho - 1) * rc_hi["wp"] + (2 * wo - 1)
                s[l_hi, l_lo] = 1.0
    return jnp.asarray(s, jnp.bfloat16)


def make_scatter(rc_lo, rc_hi):
    """(4, Lpad_lo, Lpad_hi) bf16 0/1 matrices implementing PixelShuffle(2) per phase."""
    p = np.zeros((4, rc_lo["Lpad"], rc_hi["Lpad"]), np.float32)
    for ph in range(4):
        dy, dx = ph // 2, ph % 2
        for n in range(rc_lo["N"]):
            for h in range(rc_lo["H"]):
                for w in range(rc_lo["W"]):
                    l_lo = (n * rc_lo["hp"] + h + 1) * rc_lo["wp"] + (w + 1)
                    l_hi = ((n * rc_hi["hp"] + 2 * h + dy + 1) * rc_hi["wp"]
                            + 2 * w + dx + 1)
                    p[ph, l_lo, l_hi] = 1.0
    return jnp.asarray(p, jnp.bfloat16)


# -------------------------------- weight packing --------------------------------

def pack_w(w_oihw):
    """OIHW f32 -> (Cout_pad8, 9*Cin_pad8) bf16; tap t = dy*3+dx occupies K-block t."""
    w = np.asarray(w_oihw, np.float32)
    co, ci = w.shape[:2]
    cop, cip = _round_up(co, 8), _round_up(ci, 8)
    out = np.zeros((cop, 9 * cip), np.float32)
    for dy in range(3):
        for dx in range(3):
            t = dy * 3 + dx
            out[:co, t * cip:t * cip + ci] = w[:, :, dy, dx]
    return jnp.asarray(out, jnp.bfloat16)


def pack_w_up(w_oihw, cbase):
    """Up-conv weight packed with output channels grouped by PixelShuffle phase."""
    w = np.asarray(w_oihw, np.float32)
    idx = np.array([c * 4 + p for p in range(4) for c in range(cbase)])
    return pack_w(w[idx])


# ------------------------------- in-kernel helpers -------------------------------

def _set_act(act_ref, val, rc, row0=0):
    """Store a (rows, Lpad) value at the canonical lane offset of the act scratch."""
    act_ref[pl.ds(row0, val.shape[0]), pl.ds(rc["store"], rc["Lpad"])] = val


def _conv3x3(act_ref, patch_ref, w, rc, cin_p, relu, mask=None):
    """One 3x3 conv as a single K=9*cin_p MXU matmul over the flat zero-halo layout.

    act_ref rows [0, cin_p) must hold the zero-halo input at lanes [store, store+Lpad);
    everything else in the read window must be zero.  Returns (Cout_pad, Lpad) f32.
    """
    lpad = rc["Lpad"]
    for t in range(9):                                   # 9 shifted tap windows
        patch_ref[pl.ds(t * cin_p, cin_p), pl.ds(0, lpad)] = (
            act_ref[pl.ds(0, cin_p), pl.ds(rc["offs"][t], lpad)])
    y = jnp.dot(w, patch_ref[pl.ds(0, 9 * cin_p), pl.ds(0, lpad)],
                preferred_element_type=jnp.float32)
    if relu:
        y = jnp.maximum(y, 0.0)
    if mask is not None:
        y = jnp.where(mask > 0.0, y, 0.0)                # zero the halo positions
    return y


def _set_shift_mix(act_ref, right, left_ref, center_ref, rc, fold):
    """ShiftConv channel mix: [right[:fold], left[fold:2fold], center[2fold:]]."""
    _set_act(act_ref, center_ref[...], rc)
    _set_act(act_ref, left_ref[pl.ds(fold, fold), :], rc, row0=fold)
    _set_act(act_ref, right[0:fold, :], rc, row0=0)


# ------------------------------------ kernels ------------------------------------

def _inc_kernel(x_ref, w1_ref, w2_ref, mask_ref, o_ref, act, patch,
                *, rc, cin1_p, cin2_p):
    act[...] = jnp.zeros_like(act)
    mask = mask_ref[...]
    _set_act(act, x_ref[...], rc)
    h = _conv3x3(act, patch, w1_ref[...], rc, cin1_p, relu=True, mask=mask)
    _set_act(act, h.astype(jnp.bfloat16), rc)
    y = _conv3x3(act, patch, w2_ref[...], rc, cin2_p, relu=True, mask=mask)
    o_ref[...] = y.astype(jnp.bfloat16)


def _down_kernel(x_ref, c1l_ref, c1c_ref, c2l_ref, c2c_ref,
                 wd_ref, w1_ref, w2_ref, sel_ref, mask_ref,
                 xd_ref, o1_ref, o2_ref, act_hi, act_lo, patch,
                 *, rc_hi, rc_lo, cin_hi_p, c, fold):
    act_hi[...] = jnp.zeros_like(act_hi)
    act_lo[...] = jnp.zeros_like(act_lo)
    mask = mask_ref[...]
    # stride-2 conv = stride-1 conv + exact 0/1 selection matmul into the low-res layout
    _set_act(act_hi, x_ref[...], rc_hi)
    y = _conv3x3(act_hi, patch, wd_ref[...], rc_hi, cin_hi_p, relu=True)
    x_down = jnp.dot(y.astype(jnp.bfloat16), sel_ref[...],
                     preferred_element_type=jnp.float32).astype(jnp.bfloat16)
    xd_ref[...] = x_down                                         # new c1 center
    # MemShiftConv c1
    _set_shift_mix(act_lo, x_down, c1l_ref, c1c_ref, rc_lo, fold)
    h1 = _conv3x3(act_lo, patch, w1_ref[...], rc_lo, c, relu=True,
                  mask=mask).astype(jnp.bfloat16)
    o1_ref[...] = h1                                             # new c2 center
    # MemShiftConv c2
    _set_shift_mix(act_lo, h1, c2l_ref, c2c_ref, rc_lo, fold)
    h2 = _conv3x3(act_lo, patch, w2_ref[...], rc_lo, c, relu=True,
                  mask=mask).astype(jnp.bfloat16)
    o2_ref[...] = h2                                             # block output


def _up_kernel(x_ref, c1l_ref, c1c_ref, c2l_ref, c2c_ref,
               w1_ref, w2_ref, wu_ref, scat_ref, mask_ref,
               o1_ref, up_ref, act, patch, *, rc, c, fold, cbase):
    act[...] = jnp.zeros_like(act)
    mask = mask_ref[...]
    x = x_ref[...]
    # MemShiftConv c1
    _set_shift_mix(act, x, c1l_ref, c1c_ref, rc, fold)
    h1 = _conv3x3(act, patch, w1_ref[...], rc, c, relu=True, mask=mask).astype(jnp.bfloat16)
    o1_ref[...] = h1                                             # new c2 center
    # MemShiftConv c2
    _set_shift_mix(act, h1, c2l_ref, c2c_ref, rc, fold)
    h2 = _conv3x3(act, patch, w2_ref[...], rc, c, relu=True, mask=mask).astype(jnp.bfloat16)
    # up conv (no ReLU) + PixelShuffle(2) as 4 exact scatter matmuls (phase-grouped weight)
    _set_act(act, h2, rc)
    y = _conv3x3(act, patch, wu_ref[...], rc, c, relu=False).astype(jnp.bfloat16)
    acc = jnp.dot(y[0:cbase, :], scat_ref[0], preferred_element_type=jnp.float32)
    for p in range(1, 4):
        acc = acc + jnp.dot(y[p * cbase:(p + 1) * cbase, :], scat_ref[p],
                            preferred_element_type=jnp.float32)
    up_ref[...] = acc.astype(jnp.bfloat16)


def _out_kernel(x_ref, in1_ref, w1_ref, w2_ref, mask_ref, o_ref, act, patch,
                *, rc, c0_p, ccat_p):
    act[...] = jnp.zeros_like(act)
    mask = mask_ref[...]
    _set_act(act, x_ref[...], rc)
    h = _conv3x3(act, patch, w1_ref[...], rc, c0_p, relu=True, mask=mask)
    _set_act(act, h.astype(jnp.bfloat16), rc)
    _set_act(act, in1_ref[...], rc, row0=c0_p)        # concat([h, in1]) along channels
    y = _conv3x3(act, patch, w2_ref[...], rc, ccat_p, relu=False)
    o_ref[...] = y                                    # final conv stays f32


def _make_single_kernel(*, rc, cin_p, fold, relu, memshift, subsample, use_mask):
    """Single-conv kernel used only during pipeline fill (partial block configs)."""
    def kernel(*args):
        i = 0
        x_ref = args[i]; i += 1
        if memshift:
            left_ref, center_ref = args[i], args[i + 1]; i += 2
        w_ref = args[i]; i += 1
        if subsample:
            sel_ref = args[i]; i += 1
        if use_mask:
            mask_ref = args[i]; i += 1
        o_ref, act, patch = args[i], args[i + 1], args[i + 2]
        act[...] = jnp.zeros_like(act)
        if memshift:
            _set_shift_mix(act, x_ref[...], left_ref, center_ref, rc, fold)
        else:
            _set_act(act, x_ref[...], rc)
        mask = mask_ref[...] if use_mask else None
        y = _conv3x3(act, patch, w_ref[...], rc, cin_p, relu=relu, mask=mask)
        if subsample:
            y = jnp.dot(y.astype(jnp.bfloat16), sel_ref[...],
                        preferred_element_type=jnp.float32)
        o_ref[...] = y.astype(o_ref.dtype)
    return kernel


# ----------------------------- pallas_call wrappers ------------------------------

_CPARAMS = pltpu.CompilerParams(dimension_semantics=("arbitrary",))


def _vspec(shape):
    nd = len(shape)
    return pl.BlockSpec(shape, lambda i, _n=nd: (0,) * _n)


class PallasBackend:
    """Steady-state compute path: 6 fused Pallas kernels per frame."""

    def __init__(self, cfg):
        self.cfg = cfg

    # ----- layout glue (once per frame) -----
    def prep_input(self, x_nchw):
        return to_halo(jnp.transpose(x_nchw, (1, 0, 2, 3)), self.cfg["rc"][0])

    def finalize_output(self, y):
        y = from_halo(y, self.cfg["out_ch"], self.cfg["rc"][0])
        return jnp.transpose(y, (1, 0, 2, 3))

    # ----- InputCvBlock (2 fused convs) -----
    def input_block(self, params, x):
        if x is None:
            return None
        rc = self.cfg["rc"][0]
        w1, w2, mask = params["w"]["inc1"], params["w"]["inc2"], params["mask"][0]
        cin1_p, cin2_p, c0 = w1.shape[1] // 9, w2.shape[1] // 9, w2.shape[0]
        kern = functools.partial(_inc_kernel, rc=rc, cin1_p=cin1_p, cin2_p=cin2_p)
        return pl.pallas_call(
            kern,
            out_shape=jax.ShapeDtypeStruct((c0, rc["Lpad"]), jnp.bfloat16),
            grid=(1,),
            in_specs=[_vspec(a.shape) for a in (x, w1, w2, mask)],
            out_specs=_vspec((c0, rc["Lpad"])),
            scratch_shapes=[pltpu.VMEM((cin2_p, rc["Lx"]), jnp.bfloat16),
                            pltpu.VMEM((9 * cin2_p, rc["Lpad"]), jnp.bfloat16)],
            compiler_params=_CPARAMS,
        )(x, w1, w2, mask)

    # ----- DownBlock (stride-2 conv + 2 MemShiftConvs, fused) -----
    def down_block(self, params, blk, x, name):
        cfg = self.cfg["down"][name]
        rc_hi, rc_lo = self.cfg["rc"][cfg["hi"]], self.cfg["rc"][cfg["lo"]]
        wd, w1, w2 = (params["w"][n] for n in cfg["w"])
        sel, mask = params["sel"][cfg["hi"]], params["mask"][cfg["lo"]]
        steady = (x is not None and blk["c1"][1] is not None
                  and blk["c2"][1] is not None)
        if not steady:                               # pipeline fill: per-conv path
            if x is not None:
                x = self._single_conv(x, wd, rc_hi, relu=True, sel=(sel, rc_lo))
            x, c1 = self._memshift_partial(blk["c1"], x, w1, rc_lo, mask)
            x, c2 = self._memshift_partial(blk["c2"], x, w2, rc_lo, mask)
            return x, {"c1": c1, "c2": c2}
        c, fold = cfg["c"], cfg["c"] // 8
        cin_hi_p = wd.shape[1] // 9
        kern = functools.partial(_down_kernel, rc_hi=rc_hi, rc_lo=rc_lo,
                                 cin_hi_p=cin_hi_p, c=c, fold=fold)
        args = (x, blk["c1"][0], blk["c1"][1], blk["c2"][0], blk["c2"][1],
                wd, w1, w2, sel, mask)
        x_down, out1, out2 = pl.pallas_call(
            kern,
            out_shape=tuple(jax.ShapeDtypeStruct((c, rc_lo["Lpad"]), jnp.bfloat16)
                            for _ in range(3)),
            grid=(1,),
            in_specs=[_vspec(a.shape) for a in args],
            out_specs=tuple(_vspec((c, rc_lo["Lpad"])) for _ in range(3)),
            scratch_shapes=[
                pltpu.VMEM((cin_hi_p, rc_hi["Lx"]), jnp.bfloat16),
                pltpu.VMEM((c, rc_lo["Lx"]), jnp.bfloat16),
                pltpu.VMEM((max(9 * cin_hi_p, 9 * c),
                            max(rc_hi["Lpad"], rc_lo["Lpad"])), jnp.bfloat16)],
            compiler_params=_CPARAMS,
        )(*args)
        return out2, {"c1": (blk["c1"][1], x_down), "c2": (blk["c2"][1], out1)}

    # ----- UpBlock (2 MemShiftConvs + up conv + PixelShuffle, fused) -----
    def up_block(self, params, blk, x, name):
        cfg = self.cfg["up"][name]
        rc_lo, rc_hi = self.cfg["rc"][cfg["lo"]], self.cfg["rc"][cfg["hi"]]
        w1, w2, wu = (params["w"][n] for n in cfg["w"])
        mask = params["mask"][cfg["lo"]]
        steady = (x is not None and blk["c1"][1] is not None
                  and blk["c2"][1] is not None)
        if not steady:                               # pipeline fill: per-conv path
            x, c1 = self._memshift_partial(blk["c1"], x, w1, rc_lo, mask)
            x, c2 = self._memshift_partial(blk["c2"], x, w2, rc_lo, mask)
            assert x is None   # the up conv only ever runs once the block is steady
            return None, {"c1": c1, "c2": c2}
        c, fold, cbase = cfg["c"], cfg["c"] // 8, cfg["cbase"]
        scat = params["scat"][cfg["hi"]]
        kern = functools.partial(_up_kernel, rc=rc_lo, c=c, fold=fold, cbase=cbase)
        args = (x, blk["c1"][0], blk["c1"][1], blk["c2"][0], blk["c2"][1],
                w1, w2, wu, scat, mask)
        out1, up_out = pl.pallas_call(
            kern,
            out_shape=(jax.ShapeDtypeStruct((c, rc_lo["Lpad"]), jnp.bfloat16),
                       jax.ShapeDtypeStruct((cbase, rc_hi["Lpad"]), jnp.bfloat16)),
            grid=(1,),
            in_specs=[_vspec(a.shape) for a in args],
            out_specs=(_vspec((c, rc_lo["Lpad"])), _vspec((cbase, rc_hi["Lpad"]))),
            scratch_shapes=[pltpu.VMEM((c, rc_lo["Lx"]), jnp.bfloat16),
                            pltpu.VMEM((9 * c, rc_lo["Lpad"]), jnp.bfloat16)],
            compiler_params=_CPARAMS,
        )(*args)
        return up_out, {"c1": (blk["c1"][1], x), "c2": (blk["c2"][1], out1)}

    # ----- OutputCvBlock (2 fused convs with channel concat) -----
    def output_block(self, params, x, in1):
        if x is None:
            return None
        rc = self.cfg["rc"][0]
        w1, w2, mask = params["w"]["outc1"], params["w"]["outc2"], params["mask"][0]
        c0_p, ccat_p, cout_p = w1.shape[0], w2.shape[1] // 9, w2.shape[0]  # c0_p == ch0
        kern = functools.partial(_out_kernel, rc=rc, c0_p=c0_p, ccat_p=ccat_p)
        args = (x, in1, w1, w2, mask)
        return pl.pallas_call(
            kern,
            out_shape=jax.ShapeDtypeStruct((cout_p, rc["Lpad"]), jnp.float32),
            grid=(1,),
            in_specs=[_vspec(a.shape) for a in args],
            out_specs=_vspec((cout_p, rc["Lpad"])),
            scratch_shapes=[pltpu.VMEM((ccat_p, rc["Lx"]), jnp.bfloat16),
                            pltpu.VMEM((9 * ccat_p, rc["Lpad"]), jnp.bfloat16)],
            compiler_params=_CPARAMS,
        )(*args)

    # ----- pipeline-fill helpers (single-conv kernels) -----
    def _memshift_partial(self, mem, x, w, rc, mask):
        left, center = mem
        if center is None:
            if x is not None and left is None:
                left = jnp.zeros_like(x)
            return None, (left, x)
        if x is None:
            # TODO(synk): end-of-stream flush (None input with a stored center) is
            # unsupported -- matches the NotImplementedError in the PyTorch module.
            raise NotImplementedError
        out = self._single_conv(x, w, rc, relu=True, mask=mask, mem=(left, center))
        return out, (center, x)

    def _single_conv(self, x, w, rc, *, relu, mask=None, mem=None, sel=None):
        cout_p, cin_p = w.shape[0], w.shape[1] // 9
        rc_out = rc if sel is None else sel[1]
        args, specs = [x], [_vspec(x.shape)]
        if mem is not None:
            args += [mem[0], mem[1]]
            specs += [_vspec(mem[0].shape), _vspec(mem[1].shape)]
        args.append(w); specs.append(_vspec(w.shape))
        if sel is not None:
            args.append(sel[0]); specs.append(_vspec(sel[0].shape))
        if mask is not None:
            args.append(mask); specs.append(_vspec(mask.shape))
        kern = _make_single_kernel(rc=rc, cin_p=cin_p, fold=cin_p // 8, relu=relu,
                                   memshift=mem is not None, subsample=sel is not None,
                                   use_mask=mask is not None)
        return pl.pallas_call(
            kern,
            out_shape=jax.ShapeDtypeStruct((cout_p, rc_out["Lpad"]), jnp.bfloat16),
            grid=(1,),
            in_specs=specs,
            out_specs=_vspec((cout_p, rc_out["Lpad"])),
            scratch_shapes=[pltpu.VMEM((cin_p, rc["Lx"]), jnp.bfloat16),
                            pltpu.VMEM((9 * cin_p, rc["Lpad"]), jnp.bfloat16)],
            compiler_params=_CPARAMS,
        )(*args)


# ---------------------------------- reference ------------------------------------

def pixel_shuffle2(x):
    """PyTorch nn.PixelShuffle(2) semantics on CNHW tensors."""
    c4, n, h, w = x.shape
    c = c4 // 4
    x = x.reshape(c, 2, 2, n, h, w)
    x = jnp.transpose(x, (0, 3, 4, 1, 5, 2))
    return x.reshape(c, n, h * 2, w * 2)


class RefBackend:
    """Pure-JAX reference path: lax.conv per conv, with the same bf16 operand rounding
    and the same bf16 storage of intermediate activations as the Pallas path."""

    def __init__(self, cfg):
        self.cfg = cfg

    def prep_input(self, x_nchw):
        return jnp.transpose(x_nchw, (1, 0, 2, 3))

    def finalize_output(self, y):
        return jnp.transpose(y, (1, 0, 2, 3))

    @staticmethod
    def _conv(x, w, stride=1, relu=False, final=False):
        xn = jnp.transpose(x, (1, 0, 2, 3)).astype(jnp.bfloat16)
        y = lax.conv_general_dilated(
            xn, w.astype(jnp.bfloat16), (stride, stride), ((1, 1), (1, 1)),
            dimension_numbers=("NCHW", "OIHW", "NCHW"),
            preferred_element_type=jnp.float32)
        y = jnp.transpose(y, (1, 0, 2, 3))
        if relu:
            y = jnp.maximum(y, 0.0)
        return y if final else y.astype(jnp.bfloat16)

    def _memshift(self, mem, x, w):
        left, center = mem
        if center is None:
            if x is not None and left is None:
                left = jnp.zeros_like(x)
            return None, (left, x)
        if x is None:
            raise NotImplementedError   # TODO(synk): flush path unsupported
        fold = center.shape[0] // 8
        mixed = jnp.concatenate([x[:fold], left[fold:2 * fold], center[2 * fold:]],
                                axis=0)
        return self._conv(mixed, w, relu=True), (center, x)

    def input_block(self, params, x):
        if x is None:
            return None
        x = self._conv(x, params["inc1"], relu=True)
        return self._conv(x, params["inc2"], relu=True)

    def down_block(self, params, blk, x, name):
        wd, w1, w2 = (params[n] for n in self.cfg["down"][name]["w"])
        if x is not None:
            x = self._conv(x, wd, stride=2, relu=True)
        x, c1 = self._memshift(blk["c1"], x, w1)
        x, c2 = self._memshift(blk["c2"], x, w2)
        return x, {"c1": c1, "c2": c2}

    def up_block(self, params, blk, x, name):
        w1, w2, wu = (params[n] for n in self.cfg["up"][name]["w"])
        x, c1 = self._memshift(blk["c1"], x, w1)
        x, c2 = self._memshift(blk["c2"], x, w2)
        if x is not None:
            x = pixel_shuffle2(self._conv(x, wu, relu=False))
        return x, {"c1": c1, "c2": c2}

    def output_block(self, params, x, in1):
        if x is None:
            return None
        h = self._conv(x, params["outc1"], relu=True)
        h = jnp.concatenate([h, in1.astype(h.dtype)], axis=0)
        return self._conv(h, params["outc2"], relu=False, final=True)


# ------------------------- stateful module mechanics ------------------------------

def none_add(a, b):
    if a is None or b is None:
        return None
    return a + b


def new_den_block_state():
    mem = lambda: (None, None)
    return {"downc0": {"c1": mem(), "c2": mem()},
            "downc1": {"c1": mem(), "c2": mem()},
            "upc2": {"c1": mem(), "c2": mem()},
            "upc1": {"c1": mem(), "c2": mem()},
            "skip1": (), "skip2": (), "skip3": ()}


def den_block_step(be, params, state, in1_raw):
    """One DenBlock.forward call (streaming; returns None during pipeline fill)."""
    in1 = be.prep_input(in1_raw)
    skip1 = (in1,) + state["skip1"]
    x0 = be.input_block(params, in1)
    skip2 = ((x0,) + state["skip2"]) if x0 is not None else state["skip2"]
    x1, downc0 = be.down_block(params, state["downc0"], x0, "downc0")
    skip3 = ((x1,) + state["skip3"]) if x1 is not None else state["skip3"]
    x2, downc1 = be.down_block(params, state["downc1"], x1, "downc1")
    x2u, upc2 = be.up_block(params, state["upc2"], x2, "upc2")
    if x2u is not None:
        s3, skip3 = skip3[-1], skip3[:-1]
    else:
        s3 = None
    x1u, upc1 = be.up_block(params, state["upc1"], none_add(x2u, s3), "upc1")
    if x1u is not None:
        s2, skip2 = skip2[-1], skip2[:-1]
        s1, skip1 = skip1[-1], skip1[:-1]
    else:
        s2 = s1 = None
    out = be.output_block(params, none_add(x1u, s2), s1)
    new_state = {"downc0": downc0, "downc1": downc1, "upc2": upc2, "upc1": upc1,
                 "skip1": skip1, "skip2": skip2, "skip3": skip3}
    return (be.finalize_output(out) if out is not None else None), new_state


def build_cfg(n, h, w, in_ch, out_ch, ch0, ch1, ch2):
    return {
        "rc": [make_rc(n, h, w), make_rc(n, h // 2, w // 2), make_rc(n, h // 4, w // 4)],
        "in_ch": in_ch, "out_ch": out_ch, "ch": (ch0, ch1, ch2),
        "down": {"downc0": dict(w=("down0", "d0c1", "d0c2"), hi=0, lo=1, c=ch1),
                 "downc1": dict(w=("down1", "d1c1", "d1c2"), hi=1, lo=2, c=ch2)},
        "up": {"upc2": dict(w=("u2c1", "u2c2", "up2"), lo=2, hi=1, c=ch2, cbase=ch1),
               "upc1": dict(w=("u1c1", "u1c2", "up1"), lo=1, hi=0, c=ch1, cbase=ch0)},
    }


def make_conv_weight(key, cout, cin):
    std = float(np.sqrt(2.0 / (cin * 9)))     # kaiming_normal_(nonlinearity='relu')
    return jax.random.normal(key, (cout, cin, 3, 3), jnp.float32) * std


# -------------------------------------- main --------------------------------------

if __name__ == "__main__":
    in_ch, out_ch = 4, 4
    ch0, ch1, ch2 = 8, 16, 32                 # DenBlock(channels=(8, 16, 32))
    N, H, W = 2, 16, 16
    PIPELINE_LATENCY = 8                      # 4 MemShiftConv stages x 2 convs
    T = PIPELINE_LATENCY + 2                  # exercise the cached steady-state trace twice

    cfg = build_cfg(N, H, W, in_ch, out_ch, ch0, ch1, ch2)
    rc0, rc1, rc2 = cfg["rc"]

    names_shapes = [
        ("inc1", 30, in_ch), ("inc2", ch0, 30),
        ("down0", ch1, ch0), ("d0c1", ch1, ch1), ("d0c2", ch1, ch1),
        ("down1", ch2, ch1), ("d1c1", ch2, ch2), ("d1c2", ch2, ch2),
        ("u2c1", ch2, ch2), ("u2c2", ch2, ch2), ("up2", ch1 * 4, ch2),
        ("u1c1", ch1, ch1), ("u1c2", ch1, ch1), ("up1", ch0 * 4, ch1),
        ("outc1", ch0, ch0), ("outc2", out_ch, ch0 + in_ch),
    ]
    key = jax.random.PRNGKey(0)
    keys = jax.random.split(key, len(names_shapes) + 1)
    params_ref = {nm: make_conv_weight(k, co, ci)
                  for (nm, co, ci), k in zip(names_shapes, keys[:-1])}

    packed = {nm: (pack_w_up(w, ch1) if nm == "up2" else
                   pack_w_up(w, ch0) if nm == "up1" else pack_w(w))
              for nm, w in params_ref.items()}
    params_k = {
        "w": packed,
        "mask": [make_mask(rc0), make_mask(rc1), make_mask(rc2)],
        "sel": [make_subsample(rc0, rc1), make_subsample(rc1, rc2)],
        "scat": [make_scatter(rc1, rc0), make_scatter(rc2, rc1)],
    }

    frames = jax.random.uniform(keys[-1], (T, N, in_ch, H, W), jnp.float32)

    pallas_be = PallasBackend(cfg)
    ref_be = RefBackend(cfg)

    # Steady-state per-frame forward: one cached jit trace containing the 6 fused
    # kernels + layout glue + skip bookkeeping.  Pipeline-fill frames (different
    # pytree structure every call, run exactly once per stream) stay eager.
    jit_step = jax.jit(functools.partial(den_block_step, pallas_be))

    state = new_den_block_state()
    outs_pallas = []
    for t in range(T):
        if t < PIPELINE_LATENCY:
            out, state = den_block_step(pallas_be, params_k, state, frames[t])
        else:
            out, state = jit_step(params_k, state, frames[t])
        outs_pallas.append(out)

    # Pure-JAX reference run (eager), same bf16 operand rounding / bf16 intermediates.
    state = new_den_block_state()
    outs_ref = []
    for t in range(T):
        out, state = den_block_step(ref_be, params_ref, state, frames[t])
        outs_ref.append(out)

    assert all(o is None for o in outs_pallas[:PIPELINE_LATENCY]), \
        "expected None during pipeline fill"
    for t in range(PIPELINE_LATENCY, T):
        y = outs_pallas[t]
        jax.block_until_ready(y)
        assert y.shape == (N, out_ch, H, W), y.shape
        np.testing.assert_allclose(np.asarray(y), np.asarray(outs_ref[t]),
                                   rtol=1e-2, atol=1e-2)
    print("KERNEL_OK")
</pallas_src>

<mosaic_0001>
module attributes {stable_mosaic.version = 11 : i64} {
  func.func @_inc_kernel(%arg0: i32, %arg1: memref<4x768xbf16, #tpu.memory_space<vmem>>, %arg2: memref<32x72xbf16, #tpu.memory_space<vmem>>, %arg3: memref<8x288xbf16, #tpu.memory_space<vmem>>, %arg4: memref<1x768xf32, #tpu.memory_space<vmem>>, %arg5: memref<8x768xbf16, #tpu.memory_space<vmem>>, %arg6: memref<32x1024xbf16, #tpu.memory_space<vmem>>, %arg7: memref<288x768xbf16, #tpu.memory_space<vmem>>) attributes {dimension_semantics = [#tpu.dimension_semantics<arbitrary>], iteration_bounds = array<i64: 1>, scalar_prefetch = 0 : i64, scratch_operands = 2 : i64, tpu.core_type = #tpu.core_type<tc>, window_params = [{pipeline_mode = #tpu.pipeline_mode<synchronous>, transform_indices = @transform_0, window_bounds = array<i64: 4, 768>}, {pipeline_mode = #tpu.pipeline_mode<synchronous>, transform_indices = @transform_1, window_bounds = array<i64: 32, 72>}, {pipeline_mode = #tpu.pipeline_mode<synchronous>, transform_indices = @transform_2, window_bounds = array<i64: 8, 288>}, {pipeline_mode = #tpu.pipeline_mode<synchronous>, transform_indices = @transform_3, window_bounds = array<i64: 1, 768>}, {pipeline_mode = #tpu.pipeline_mode<synchronous>, transform_indices = @transform_4, window_bounds = array<i64: 8, 768>}]} {
    %cst = arith.constant 0.000000e+00 : bf16
    %0 = vector.broadcast %cst : bf16 to vector<32x1024xbf16>
    %c0 = arith.constant 0 : index
    %c0_0 = arith.constant 0 : index
    %1 = vector.load %arg6[%c0, %c0_0] : memref<32x1024xbf16, #tpu.memory_space<vmem>>, vector<32x1024xbf16>
    tpu.vector_store %arg6[%c0, %c0_0], %0 {strides = array<i32>} : memref<32x1024xbf16, #tpu.memory_space<vmem>>, vector<32x1024xbf16>,
    %c0_1 = arith.constant 0 : index
    %c0_2 = arith.constant 0 : index
    %2 = vector.load %arg4[%c0_1, %c0_2] : memref<1x768xf32, #tpu.memory_space<vmem>>, vector<1x768xf32>
    %c0_3 = arith.constant 0 : index
    %c0_4 = arith.constant 0 : index
    %3 = vector.load %arg1[%c0_3, %c0_4] : memref<4x768xbf16, #tpu.memory_space<vmem>>, vector<4x768xbf16>
    %c0_5 = arith.constant 0 : index
    %c128 = arith.constant 128 : index
    %4 = vector.load %arg6[%c0_5, %c128] : memref<32x1024xbf16, #tpu.memory_space<vmem>>, vector<4x768xbf16>
    tpu.vector_store %arg6[%c0_5, %c128], %3 {strides = array<i32>} : memref<32x1024xbf16, #tpu.memory_space<vmem>>, vector<4x768xbf16>,
    %c0_6 = arith.constant 0 : index
    %c0_7 = arith.constant 0 : index
    %5 = vector.load %arg2[%c0_6, %c0_7] : memref<32x72xbf16, #tpu.memory_space<vmem>>, vector<32x72xbf16>
    %c0_8 = arith.constant 0 : index
    %c109 = arith.constant 109 : index
    %6 = vector.load %arg6[%c0_8, %c109] : memref<32x1024xbf16, #tpu.memory_space<vmem>>, vector<8x768xbf16>
    %c0_9 = arith.constant 0 : index
    %c0_10 = arith.constant 0 : index
    %7 = vector.load %arg7[%c0_9, %c0_10] : memref<288x768xbf16, #tpu.memory_space<vmem>>, vector<8x768xbf16>
    tpu.vector_store %arg7[%c0_9, %c0_10], %6 {strides = array<i32>} : memref<288x768xbf16, #tpu.memory_space<vmem>>, vector<8x768xbf16>,
    %c0_11 = arith.constant 0 : index
    %c110 = arith.constant 110 : index
    %8 = vector.load %arg6[%c0_11, %c110] : memref<32x1024xbf16, #tpu.memory_space<vmem>>, vector<8x768xbf16>
    %c8 = arith.constant 8 : index
    %c0_12 = arith.constant 0 : index
    %9 = vector.load %arg7[%c8, %c0_12] : memref<288x768xbf16, #tpu.memory_space<vmem>>, vector<8x768xbf16>
    tpu.vector_store %arg7[%c8, %c0_12], %8 {strides = array<i32>} : memref<288x768xbf16, #tpu.memory_space<vmem>>, vector<8x768xbf16>,
    %c0_13 = arith.constant 0 : index
    %c111 = arith.constant 111 : index
    %10 = vector.load %arg6[%c0_13, %c111] : memref<32x1024xbf16, #tpu.memory_space<vmem>>, vector<8x768xbf16>
    %c16 = arith.constant 16 : index
    %c0_14 = arith.constant 0 : index
    %11 = vector.load %arg7[%c16, %c0_14] : memref<288x768xbf16, #tpu.memory_space<vmem>>, vector<8x768xbf16>
    tpu.vector_store %arg7[%c16, %c0_14], %10 {strides = array<i32>} : memref<288x768xbf16, #tpu.memory_space<vmem>>, vector<8x768xbf16>,
    %c0_15 = arith.constant 0 : index
    %c127 = arith.constant 127 : index
    %12 = vector.load %arg6[%c0_15, %c127] : memref<32x1024xbf16, #tpu.memory_space<vmem>>, vector<8x768xbf16>
    %c24 = arith.constant 24 : index
    %c0_16 = arith.constant 0 : index
    %13 = vector.load %arg7[%c24, %c0_16] : memref<288x768xbf16, #tpu.memory_space<vmem>>, vector<8x768xbf16>
    tpu.vector_store %arg7[%c24, %c0_16], %12 {strides = array<i32>} : memref<288x768xbf16, #tpu.memory_space<vmem>>, vector<8x768xbf16>,
    %c0_17 = arith.constant 0 : index
    %c128_18 = arith.constant 128 : index
    %14 = vector.load %arg6[%c0_17, %c128_18] : memref<32x1024xbf16, #tpu.memory_space<vmem>>, vector<8x768xbf16>
    %c32 = arith.constant 32 : index
    %c0_19 = arith.constant 0 : index
    %15 = vector.load %arg7[%c32, %c0_19] : memref<288x768xbf16, #tpu.memory_space<vmem>>, vector<8x768xbf16>
    tpu.vector_store %arg7[%c32, %c0_19], %14 {strides = array<i32>} : memref<288x768xbf16, #tpu.memory_space<vmem>>, vector<8x768xbf16>,
    %c0_20 = arith.constant 0 : index
    %c129 = arith.constant 129 : index
    %16 = vector.load %arg6[%c0_20, %c129] : memref<32x1024xbf16, #tpu.memory_space<vmem>>, vector<8x768xbf16>
    %c40 = arith.constant 40 : index
    %c0_21 = arith.constant 0 : index
    %17 = vector.load %arg7[%c40, %c0_21] : memref<288x768xbf16, #tpu.memory_space<vmem>>, vector<8x768xbf16>
    tpu.vector_store %arg7[%c40, %c0_21], %16 {strides = array<i32>} : memref<288x768xbf16, #tpu.memory_space<vmem>>, vector<8x768xbf16>,
    %c0_22 = arith.constant 0 : index
    %c145 = arith.constant 145 : index
    %18 = vector.load %arg6[%c0_22, %c145] : memref<32x1024xbf16, #tpu.memory_space<vmem>>, vector<8x768xbf16>
    %c48 = arith.constant 48 : index
    %c0_23 = arith.constant 0 : index
    %19 = vector.load %arg7[%c48, %c0_23] : memref<288x768xbf16, #tpu.memory_space<vmem>>, vector<8x768xbf16>
    tpu.vector_store %arg7[%c48, %c0_23], %18 {strides = array<i32>} : memref<288x768xbf16, #tpu.memory_space<vmem>>, vector<8x768xbf16>,
    %c0_24 = arith.constant 0 : index
    %c146 = arith.constant 146 : index
    %20 = vector.load %arg6[%c0_24, %c146] : memref<32x1024xbf16, #tpu.memory_space<vmem>>, vector<8x768xbf16>
    %c56 = arith.constant 56 : index
    %c0_25 = arith.constant 0 : index
    %21 = vector.load %arg7[%c56, %c0_25] : memref<288x768xbf16, #tpu.memory_space<vmem>>, vector<8x768xbf16>
    tpu.vector_store %arg7[%c56, %c0_25], %20 {strides = array<i32>} : memref<288x768xbf16, #tpu.memory_space<vmem>>, vector<8x768xbf16>,
    %c0_26 = arith.constant 0 : index
    %c147 = arith.constant 147 : index
    %22 = vector.load %arg6[%c0_26, %c147] : memref<32x1024xbf16, #tpu.memory_space<vmem>>, vector<8x768xbf16>
    %c64 = arith.constant 64 : index
    %c0_27 = arith.constant 0 : index
    %23 = vector.load %arg7[%c64, %c0_27] : memref<288x768xbf16, #tpu.memory_space<vmem>>, vector<8x768xbf16>
    tpu.vector_store %arg7[%c64, %c0_27], %22 {strides = array<i32>} : memref<288x768xbf16, #tpu.memory_space<vmem>>, vector<8x768xbf16>,
    %c0_28 = arith.constant 0 : index
    %c0_29 = arith.constant 0 : index
    %24 = vector.load %arg7[%c0_28, %c0_29] : memref<288x768xbf16, #tpu.memory_space<vmem>>, vector<72x768xbf16>
    %cst_30 = arith.constant dense<0.000000e+00> : vector<32x768xf32>
    %25 = tpu.matmul %5, %24, %cst_30 {dimension_numbers = #tpu.dot_dimension_numbers<[1], [0], [0], [1], [0, 0, 1, 1], [], []>} : vector<32x72xbf16>, vector<72x768xbf16>, vector<32x768xf32> -> vector<32x768xf32>
    %cst_31 = arith.constant 0.000000e+00 : f32
    %26 = vector.broadcast %cst_31 : f32 to vector<32x768xf32>
    %27 = arith.maximumf %25, %26 : vector<32x768xf32>
    %cst_32 = arith.constant 0.000000e+00 : f32
    %28 = vector.broadcast %cst_32 : f32 to vector<1x768xf32>
    %29 = arith.cmpf ogt, %2, %28 : vector<1x768xf32>
    %cst_33 = arith.constant 0.000000e+00 : f32
    %30 = vector.shape_cast %29 : vector<1x768xi1> to vector<1x768xi1>
    %31 = vector.broadcast %30 : vector<1x768xi1> to vector<32x768xi1>
    %32 = vector.broadcast %cst_33 : f32 to vector<32x768xf32>
    %33 = arith.select %31, %27, %32 : vector<32x768xi1>, vector<32x768xf32>
    %34 = arith.truncf %33 : vector<32x768xf32> to vector<32x768xbf16>
    %c0_34 = arith.constant 0 : index
    %c128_35 = arith.constant 128 : index
    %35 = vector.load %arg6[%c0_34, %c128_35] : memref<32x1024xbf16, #tpu.memory_space<vmem>>, vector<32x768xbf16>
    tpu.vector_store %arg6[%c0_34, %c128_35], %34 {strides = array<i32>} : memref<32x1024xbf16, #tpu.memory_space<vmem>>, vector<32x768xbf16>,
    %c0_36 = arith.constant 0 : index
    %c0_37 = arith.constant 0 : index
    %36 = vector.load %arg3[%c0_36, %c0_37] : memref<8x288xbf16, #tpu.memory_space<vmem>>, vector<8x288xbf16>
    %c0_38 = arith.constant 0 : index
    %c109_39 = arith.constant 109 : index
    %37 = vector.load %arg6[%c0_38, %c109_39] : memref<32x1024xbf16, #tpu.memory_space<vmem>>, vector<32x768xbf16>
    %c0_40 = arith.constant 0 : index
    %c0_41 = arith.constant 0 : index
    %38 = vector.load %arg7[%c0_40, %c0_41] : memref<288x768xbf16, #tpu.memory_space<vmem>>, vector<32x768xbf16>
    tpu.vector_store %arg7[%c0_40, %c0_41], %37 {strides = array<i32>} : memref<288x768xbf16, #tpu.memory_space<vmem>>, vector<32x768xbf16>,
    %c0_42 = arith.constant 0 : index
    %c110_43 = arith.constant 110 : index
    %39 = vector.load %arg6[%c0_42, %c110_43] : memref<32x1024xbf16, #tpu.memory_space<vmem>>, vector<32x768xbf16>
    %c32_44 = arith.constant 32 : index
    %c0_45 = arith.constant 0 : index
    %40 = vector.load %arg7[%c32_44, %c0_45] : memref<288x768xbf16, #tpu.memory_space<vmem>>, vector<32x768xbf16>
    tpu.vector_store %arg7[%c32_44, %c0_45], %39 {strides = array<i32>} : memref<288x768xbf16, #tpu.memory_space<vmem>>, vector<32x768xbf16>,
    %c0_46 = arith.constant 0 : index
    %c111_47 = arith.constant 111 : index
    %41 = vector.load %arg6[%c0_46, %c111_47] : memref<32x1024xbf16, #tpu.memory_space<vmem>>, vector<32x768xbf16>
    %c64_48 = arith.constant 64 : index
    %c0_49 = arith.constant 0 : index
    %42 = vector.load %arg7[%c64_48, %c0_49] : memref<288x768xbf16, #tpu.memory_space<vmem>>, vector<32x768xbf16>
    tpu.vector_store %arg7[%c64_48, %c0_49], %41 {strides = array<i32>} : memref<288x768xbf16, #tpu.memory_space<vmem>>, vector<32x768xbf16>,
    %c0_50 = arith.constant 0 : index
    %c127_51 = arith.constant 127 : index
    %43 = vector.load %arg6[%c0_50, %c127_51] : memref<32x1024xbf16, #tpu.memory_space<vmem>>, vector<32x768xbf16>
    %c96 = arith.constant 96 : index
    %c0_52 = arith.constant 0 : index
    %44 = vector.load %arg7[%c96, %c0_52] : memref<288x768xbf16, #tpu.memory_space<vmem>>, vector<32x768xbf16>
    tpu.vector_store %arg7[%c96, %c0_52], %43 {strides = array<i32>} : memref<288x768xbf16, #tpu.memory_space<vmem>>, vector<32x768xbf16>,
    %c0_53 = arith.constant 0 : index
    %c128_54 = arith.constant 128 : index
    %45 = vector.load %arg6[%c0_53, %c128_54] : memref<32x1024xbf16, #tpu.memory_space<vmem>>, vector<32x768xbf16>
    %c128_55 = arith.constant 128 : index
    %c0_56 = arith.constant 0 : index
    %46 = vector.load %arg7[%c128_55, %c0_56] : memref<288x768xbf16, #tpu.memory_space<vmem>>, vector<32x768xbf16>
    tpu.vector_store %arg7[%c128_55, %c0_56], %45 {strides = array<i32>} : memref<288x768xbf16, #tpu.memory_space<vmem>>, vector<32x768xbf16>,
    %c0_57 = arith.constant 0 : index
    %c129_58 = arith.constant 129 : index
    %47 = vector.load %arg6[%c0_57, %c129_58] : memref<32x1024xbf16, #tpu.memory_space<vmem>>, vector<32x768xbf16>
    %c160 = arith.constant 160 : index
    %c0_59 = arith.constant 0 : index
    %48 = vector.load %arg7[%c160, %c0_59] : memref<288x768xbf16, #tpu.memory_space<vmem>>, vector<32x768xbf16>
    tpu.vector_store %arg7[%c160, %c0_59], %47 {strides = array<i32>} : memref<288x768xbf16, #tpu.memory_space<vmem>>, vector<32x768xbf16>,
    %c0_60 = arith.constant 0 : index
    %c145_61 = arith.constant 145 : index
    %49 = vector.load %arg6[%c0_60, %c145_61] : memref<32x1024xbf16, #tpu.memory_space<vmem>>, vector<32x768xbf16>
    %c192 = arith.constant 192 : index
    %c0_62 = arith.constant 0 : index
    %50 = vector.load %arg7[%c192, %c0_62] : memref<288x768xbf16, #tpu.memory_space<vmem>>, vector<32x768xbf16>
    tpu.vector_store %arg7[%c192, %c0_62], %49 {strides = array<i32>} : memref<288x768xbf16, #tpu.memory_space<vmem>>, vector<32x768xbf16>,
    %c0_63 = arith.constant 0 : index
    %c146_64 = arith.constant 146 : index
    %51 = vector.load %arg6[%c0_63, %c146_64] : memref<32x1024xbf16, #tpu.memory_space<vmem>>, vector<32x768xbf16>
    %c224 = arith.constant 224 : index
    %c0_65 = arith.constant 0 : index
    %52 = vector.load %arg7[%c224, %c0_65] : memref<288x768xbf16, #tpu.memory_space<vmem>>, vector<32x768xbf16>
    tpu.vector_store %arg7[%c224, %c0_65], %51 {strides = array<i32>} : memref<288x768xbf16, #tpu.memory_space<vmem>>, vector<32x768xbf16>,
    %c0_66 = arith.constant 0 : index
    %c147_67 = arith.constant 147 : index
    %53 = vector.load %arg6[%c0_66, %c147_67] : memref<32x1024xbf16, #tpu.memory_space<vmem>>, vector<32x768xbf16>
    %c256 = arith.constant 256 : index
    %c0_68 = arith.constant 0 : index
    %54 = vector.load %arg7[%c256, %c0_68] : memref<288x768xbf16, #tpu.memory_space<vmem>>, vector<32x768xbf16>
    tpu.vector_store %arg7[%c256, %c0_68], %53 {strides = array<i32>} : memref<288x768xbf16, #tpu.memory_space<vmem>>, vector<32x768xbf16>,
    %c0_69 = arith.constant 0 : index
    %c0_70 = arith.constant 0 : index
    %55 = vector.load %arg7[%c0_69, %c0_70] : memref<288x768xbf16, #tpu.memory_space<vmem>>, vector<288x768xbf16>
    %cst_71 = arith.constant dense<0.000000e+00> : vector<8x768xf32>
    %56 = tpu.matmul %36, %55, %cst_71 {dimension_numbers = #tpu.dot_dimension_numbers<[1], [0], [0], [1], [0, 0, 1, 1], [], []>} : vector<8x288xbf16>, vector<288x768xbf16>, vector<8x768xf32> -> vector<8x768xf32>
    %cst_72 = arith.constant 0.000000e+00 : f32
    %57 = vector.broadcast %cst_72 : f32 to vector<8x768xf32>
    %58 = arith.maximumf %56, %57 : vector<8x768xf32>
    %cst_73 = arith.constant 0.000000e+00 : f32
    %59 = vector.broadcast %cst_73 : f32 to vector<1x768xf32>
    %60 = arith.cmpf ogt, %2, %59 : vector<1x768xf32>
    %cst_74 = arith.constant 0.000000e+00 : f32
    %61 = vector.shape_cast %60 : vector<1x768xi1> to vector<1x768xi1>
    %62 = vector.broadcast %61 : vector<1x768xi1> to vector<8x768xi1>
    %63 = vector.broadcast %cst_74 : f32 to vector<8x768xf32>
    %64 = arith.select %62, %58, %63 : vector<8x768xi1>, vector<8x768xf32>
    %65 = arith.truncf %64 : vector<8x768xf32> to vector<8x768xbf16>
    %c0_75 = arith.constant 0 : index
    %c0_76 = arith.constant 0 : index
    %66 = vector.load %arg5[%c0_75, %c0_76] : memref<8x768xbf16, #tpu.memory_space<vmem>>, vector<8x768xbf16>
    tpu.vector_store %arg5[%c0_75, %c0_76], %65 {strides = array<i32>} : memref<8x768xbf16, #tpu.memory_space<vmem>>, vector<8x768xbf16>,
    return
  }
  func.func @transform_0(%arg0: i32) -> (i32, i32) {
    %c0_i32 = arith.constant 0 : i32
    %c0_i32_0 = arith.constant 0 : i32
    %c0_i32_1 = arith.constant 0 : i32
    return %c0_i32, %c0_i32_0 : i32, i32
  }
  func.func @transform_1(%arg0: i32) -> (i32, i32) {
    %c0_i32 = arith.constant 0 : i32
    %c0_i32_0 = arith.constant 0 : i32
    %c0_i32_1 = arith.constant 0 : i32
    return %c0_i32, %c0_i32_0 : i32, i32
  }
  func.func @transform_2(%arg0: i32) -> (i32, i32) {
    %c0_i32 = arith.constant 0 : i32
    %c0_i32_0 = arith.constant 0 : i32
    %c0_i32_1 = arith.constant 0 : i32
    return %c0_i32, %c0_i32_0 : i32, i32
  }
  func.func @transform_3(%arg0: i32) -> (i32, i32) {
    %c0_i32 = arith.constant 0 : i32
    %c0_i32_0 = arith.constant 0 : i32
    %c0_i32_1 = arith.constant 0 : i32
    return %c0_i32, %c0_i32_0 : i32, i32
  }
  func.func @transform_4(%arg0: i32) -> (i32, i32) {
    %c0_i32 = arith.constant 0 : i32
    %c0_i32_0 = arith.constant 0 : i32
    %c0_i32_1 = arith.constant 0 : i32
    return %c0_i32, %c0_i32_0 : i32, i32
  }
}

</mosaic_0001>

<bundles_post_ra>
// kernel: tpu_custom_call.1
= control target key start
LH: loop header
LB: loop body
LE: loop exit
PB: predicated region body
PF: predicated region fallthrough
CT: control target
= control target key end

     0   :  { %9 = vsyncpa [#allocation5], 0  ;;  %s4794_s0 = inlined_call_operand.hbm [shape: bf16[4,768], index: 0, kind: input, shape index: {}]   ;;  %s4795_s1 = inlined_call_operand.hbm [shape: bf16[32,72], index: 1, kind: input, shape index: {}]   ;;  %s4796_s2 = inlined_call_operand.hbm [shape: bf16[8,288], index: 2, kind: input, shape index: {}]   ;;  %s4797_s3 = inlined_call_operand.hbm [shape: f32[1,768], index: 3, kind: input, shape index: {}]   ;;  %s4798_s4 = inlined_call_operand.hbm [shape: bf16[8,768], index: 4, kind: output, shape index: {}]  }
   0x1   :  { %10 = vsyncpa [#allocation8], 0 }
   0x2   :  { %11 = vsyncpa [#allocation11], 0 }
   0x3   :  { %12 = vsyncpa [#allocation6], 0  ;;  %s3245_s15 = smov [#allocation7]  }
   0x4   :  { %s28_s16 = sshll.u32 %s3245_s15, 4  ;;  %s29_s16 = int_to_ptr.vmem [resolvable:$true] %s28_s16 }
   0x5   :  { %s3145_s17 = scalar_lea.vmem %s29_s16, 256  ;;  %p3150_p1 = scmp.lt.s32.totalorder %s29_s16, %s29_s16 }
   0x6   :  { %p3146_p0 = scmp.ne.s32.totalorder %s29_s16, %s3145_s17  ;;  %p3151_p2 = scmp.lt.s32.totalorder %s3145_s17, %s3145_s17 }
   0x8   :  { %p3152_p3 = por %p3151_p2, %p3150_p1 }
   0xa   :  { %p3153_p4 = pnand %p3152_p3, %p3146_p0 }
   0xc   :  { %3156 = shalt.err (!%p3153_p4)
}
   0xd   :  { %s3246_s18 = smov 64   ;;  %s3247_s19 = smov 4  }
   0xe   :  { %34 = dma.hbm_to_vmem [thread:$0]  %s4795_s1, 256, %s29_s16, [#allocation8], %s3246_s18, %s3246_s18, %s3247_s19  }
   0xf   :  { %s3248_s22 = smov [#allocation4]   ;;  %s3249_s24 = smov [#allocation9]  }
  0x10   :  { %s19_s23 = sshll.u32 %s3248_s22, 4  ;;  %s41_s25 = sshll.u32 %s3249_s24, 4  ;;  %s20_s23 = int_to_ptr.vmem [resolvable:$true] %s19_s23  ;;  %s42_s25 = int_to_ptr.vmem [resolvable:$true] %s41_s25 }
  0x11   :  { %s3165_s26 = scalar_lea.vmem %s20_s23, 192  ;;  %p3170_p6 = scmp.lt.s32.totalorder %s20_s23, %s20_s23 }
  0x12   :  { %p3166_p5 = scmp.ne.s32.totalorder %s20_s23, %s3165_s26  ;;  %p3171_p7 = scmp.lt.s32.totalorder %s3165_s26, %s3165_s26 }
  0x14   :  { %p3172_p8 = por %p3171_p7, %p3170_p6 }
  0x16   :  { %p3173_p9 = pnand %p3172_p8, %p3166_p5 }
  0x18   :  { %3176 = shalt.err (!%p3173_p9)
}
  0x19   :  { %22 = dma.hbm_to_vmem [thread:$0]  %s4794_s0, 192, %s20_s23, [#allocation5]  }
  0x1a   :  { %s3185_s29 = scalar_lea.vmem %s42_s25, 192  ;;  %p3190_p11 = scmp.lt.s32.totalorder %s42_s25, %s42_s25 }
  0x1b   :  { %p3186_p10 = scmp.ne.s32.totalorder %s42_s25, %s3185_s29  ;;  %p3191_p12 = scmp.lt.s32.totalorder %s3185_s29, %s3185_s29 }
  0x1d   :  { %p3192_p13 = por %p3191_p12, %p3190_p11 }
  0x1f   :  { %p3193_p0 = pnand %p3192_p13, %p3186_p10 }
  0x21   :  { %3196 = shalt.err (!%p3193_p0)
}
  0x22   :  { %44 = dma.hbm_to_vmem [thread:$0]  %s4796_s2, 192, %s42_s25, [#allocation8]  }
  0x23   :  { %s3250_s5 = smov [#allocation10]  }
  0x24   :  { %s51_s6 = sshll.u32 %s3250_s5, 4  ;;  %s52_s6 = int_to_ptr.vmem [resolvable:$true] %s51_s6 }
  0x25   :  { %s3205_s7 = scalar_lea.vmem %s52_s6, 96  ;;  %p3210_p2 = scmp.lt.s32.totalorder %s52_s6, %s52_s6 }
  0x26   :  { %p3206_p1 = scmp.ne.s32.totalorder %s52_s6, %s3205_s7  ;;  %p3211_p3 = scmp.lt.s32.totalorder %s3205_s7, %s3205_s7 }
  0x28   :  { %p3212_p4 = por %p3211_p3, %p3210_p2 }
  0x2a   :  { %p3213_p5 = pnand %p3212_p4, %p3206_p1 }
  0x2c   :  { %3216 = shalt.err (!%p3213_p5)
}
  0x2d   :  { %54 = dma.hbm_to_vmem [thread:$0]  %s4797_s3, 96, %s52_s6, [#allocation11]  }
  0x2e   :  { %3237 = dma.done.wait [#allocation5], 192  }
  0x2f   :  { %3238 = vsyncadd [#allocation5], 4294967104 }
  0x30   :  { %3239 = dma.done.wait [#allocation8], 448  }
  0x31   :  { %3240 = vsyncadd [#allocation8], 4294966848 }
  0x32   :  { %3241 = dma.done.wait [#allocation11], 96  }
  0x33   :  { %3242 = vsyncadd [#allocation11], 4294967200  ;;  %v4799_v0 = vmov 0   ;;  %v85_v1 = vld [vmem:[#allocation4] sm:$0xff]  ;;  %s3252_s2 = smov 109   ;;  %s3253_s3 = smov 111  }
  0x34   :  { %68 = vst [vmem:[#allocation2] sm:$0xff] %v4799_v0  ;;  %69 = vst [vmem:[#allocation2 + $0x8] sm:$0xff] %v4799_v0  ;;  %622 = vmatprep.mubr.bf16.mxu0 %v4799_v0  ;;  %v2927_v2 = vld.sshfl [vmem:[#allocation4 + $0x8] sm:$0x33 pattern:$0x76325410]  ;;  %v89_v3 = vcombine.high %v85_v1, %v85_v1 }
  0x35   :  { %70 = vst [vmem:[#allocation2 + $0x10] sm:$0xff] %v4799_v0  ;;  %71 = vst [vmem:[#allocation2 + $0x18] sm:$0xff] %v4799_v0  ;;  %s3254_s9 = smov 110   ;;  %s3255_s10 = smov 127   ;;  %vm141_vm0 = vcmask 1043456   ;;  %vm380_vm1 = vcmask 891904  }
  0x36   :  { %72 = vst [vmem:[#allocation2 + $0x20] sm:$0xff] %v4799_v0  ;;  %73 = vst [vmem:[#allocation2 + $0x28] sm:$0xff] %v4799_v0  ;;  %s3256_s11 = smov 17   ;;  %s3257_s12 = smov 1   ;;  %vm347_vm2 = vcmask 900096   ;;  %vm314_vm3 = vcmask 908288  }
  0x37   :  { %74 = vst [vmem:[#allocation2 + $0x30] sm:$0xff] %v4799_v0  ;;  %75 = vst [vmem:[#allocation2 + $0x38] sm:$0xff] %v4799_v0  ;;  %s3258_s13 = smov 19   ;;  %s3259_s14 = smov 18   ;;  %vm281_vm4 = vcmask 1039360   ;;  %vm242_vm5 = vcmask 7168  }
  0x38   :  { %76 = vst [vmem:[#allocation2 + $0x40] sm:$0xff] %v4799_v0  ;;  %77 = vst [vmem:[#allocation2 + $0x48] sm:$0xff] %v4799_v0  ;;  %vm209_vm6 = vcmask 138240   ;;  %vm143_vm7 = vcmask 154624   ;;  %vm176_vm8 = vcmask 146432   ;;  %vm564_vm9 = vcmask 588800  }
  0x39   :  { %78 = vst [vmem:[#allocation2 + $0x50] sm:$0xff] %v4799_v0  ;;  %79 = vst [vmem:[#allocation2 + $0x58] sm:$0xff] %v4799_v0  ;;  %s3260_s15 = smov [#allocation12]  }
  0x3a   :  { %80 = vst [vmem:[#allocation2 + $0x60] sm:$0xff] %v4799_v0  ;;  %81 = vst [vmem:[#allocation2 + $0x68] sm:$0xff] %v4799_v0  ;;  %s2916_s16 = sshll.u32 %s3260_s15, 4  ;;  %s2917_s16 = int_to_ptr.vmem [resolvable:$true] %s2916_s16 }
  0x3b   :  { %82 = vst [vmem:[#allocation2 + $0x70] sm:$0xff] %v4799_v0  ;;  %83 = vst [vmem:[#allocation2 + $0x78] sm:$0xff] %v4799_v0  ;;  %s3217_s17 = scalar_lea.vmem %s2917_s16, 384  ;;  %p3222_p7 = scmp.lt.s32.totalorder %s2917_s16, %s2917_s16 }
  0x3c   :  { %2928 = vst.sshfl [vmem:[#allocation2 + $0x4] sm:$0xf pattern:$0x76325410] %v85_v1  ;;  %116 = vst [vmem:[#allocation2 + $0x14] sm:$0x33] %v2927_v2  ;;  %p3218_p6 = scmp.ne.s32.totalorder %s2917_s16, %s3217_s17  ;;  %p3223_p8 = scmp.lt.s32.totalorder %s3217_s17, %s3217_s17 }
  0x3d   :  { %2929 = vst.sshfl [vmem:[#allocation2 + $0xc] sm:$0xf pattern:$0x76325410] %v89_v3  ;;  %v296_v10 = vld [vmem:[#allocation2 + $0x1c] sm:$0xf] }
  0x3e   :  { %v362_v11 = vld [vmem:[#allocation2 + $0x1c] sm:$0xf]  ;;  %p3224_p9 = por %p3223_p8, %p3222_p7 }
  0x3f   :  { %v263_v12 = vld [vmem:[#allocation2 + $0x1c] sm:$0xf] }
  0x40   :  { %v329_v13 = vld [vmem:[#allocation2 + $0x1c] sm:$0xf]  ;;  %p3225_p10 = pnand %p3224_p9, %p3218_p6 }
  0x43   :  { %v3315_v4 = vld [vmem:[#allocation2 + $0x4] sm:$0xff]  ;;  %v3343_v8 = vld [vmem:[#allocation2 + $0x14] sm:$0xff] }
  0x44   :  { %367 = vrot.lane.b32.xlu0 %v3315_v4, %s3252_s2  ;;  %301 = vrot.lane.b32.xlu1 %v3315_v4, %s3253_s3  ;;  %v3321_v5 = vld [vmem:[#allocation2 + $0xc] sm:$0xff]  ;;  %v188_v7 = vld [vmem:[#allocation2] sm:$0xff]  ;;  %v224_v14 = vld [vmem:[#allocation2 + $0x18] sm:$0xf] }
  0x45   :  { %v189_v6 = vld [vmem:[#allocation2 + $0x8] sm:$0xff]  ;;  %v223_v9 = vld [vmem:[#allocation2 + $0x10] sm:$0xff]  ;;  %v191_v15 = vld [vmem:[#allocation2 + $0x18] sm:$0xf] }
  0x46   :  { %v158_v16 = vld [vmem:[#allocation2 + $0x18] sm:$0xf] }
  0x47   :  { %v124_v17 = vld [vmem:[#allocation2 + $0x18] sm:$0xf] }
  0x48   :  { %334 = vrot.lane.b32.xlu0 %v3315_v4, %s3254_s9  ;;  %303 = vrot.lane.b32.xlu1 %v3321_v5, %s3253_s3 }
  0x4c   :  { %336 = vrot.lane.b32.xlu1 %v3321_v5, %s3254_s9  ;;  %268 = vrot.lane.b32.xlu0 %v3315_v4, %s3255_s10 }
  0x50   :  { %270 = vrot.lane.b32.xlu1 %v3321_v5, %s3255_s10  ;;  %369 = vrot.lane.b32.xlu0 %v3321_v5, %s3252_s2 }
  0x54   :  { %198 = vrot.lane.b32.xlu1 %v189_v6, %s3256_s11  ;;  %196 = vrot.lane.b32.xlu0 %v188_v7, %s3256_s11 }
  0x58   :  { %231 = vrot.lane.b32.xlu1 %v189_v6, %s3257_s12  ;;  %229 = vrot.lane.b32.xlu0 %v188_v7, %s3257_s12 }
  0x5c   :  { %131 = vrot.lane.b32.xlu1 %v189_v6, %s3258_s13  ;;  %129 = vrot.lane.b32.xlu0 %v188_v7, %s3258_s13 }
  0x60   :  { %165 = vrot.lane.b32.xlu1 %v189_v6, %s3259_s14  ;;  %163 = vrot.lane.b32.xlu0 %v188_v7, %s3259_s14 }
  0x64   :  { %305 = vrot.lane.b32.xlu1 %v3343_v8, %s3253_s3  ;;  %371 = vrot.lane.b32.xlu0 %v3343_v8, %s3252_s2 }
  0x68   :  { %272 = vrot.lane.b32.xlu1 %v3343_v8, %s3255_s10  ;;  %338 = vrot.lane.b32.xlu0 %v3343_v8, %s3254_s9 }
  0x6c   :  { %233 = vrot.lane.b32.xlu1 %v223_v9, %s3257_s12  ;;  %200 = vrot.lane.b32.xlu0 %v223_v9, %s3256_s11 }
  0x70   :  { %167 = vrot.lane.b32.xlu1 %v223_v9, %s3259_s14  ;;  %133 = vrot.lane.b32.xlu0 %v223_v9, %s3258_s13 }
  0x74   :  { %307 = vrot.lane.b32.xlu1 %v296_v10, %s3253_s3  ;;  %373 = vrot.lane.b32.xlu0 %v362_v11, %s3252_s2 }
  0x78   :  { %274 = vrot.lane.b32.xlu1 %v263_v12, %s3255_s10  ;;  %340 = vrot.lane.b32.xlu0 %v329_v13, %s3254_s9 }
  0x7c   :  { %235 = vrot.lane.b32.xlu1 %v224_v14, %s3257_s12  ;;  %202 = vrot.lane.b32.xlu0 %v191_v15, %s3256_s11 }
  0x80   :  { %169 = vrot.lane.b32.xlu1 %v158_v16, %s3259_s14  ;;  %135 = vrot.lane.b32.xlu0 %v124_v17, %s3258_s13 }
  0xb6   :  { %v368_v18 = vpop.permute.xlu0 %367  ;;  %v302_v19 = vpop.permute.xlu1 %301 }
  0xb7   :  { %v375_v27 = vrot.slane %v368_v18, 4  ;;  %v309_v30 = vrot.slane %v302_v19, 4 }
  0xba   :  { %v335_v20 = vpop.permute.xlu0 %334  ;;  %v3365_v21 = vpop.permute.xlu1 %303 }
  0xbb   :  { %v342_v25 = vrot.slane %v335_v20, 4  ;;  %v310_v26 = vrot.slane %v3365_v21, 4 }
  0xbd   :  { %v313_v36 = vsel %vm141_vm0, %v309_v30, %v310_v26 }
  0xbe   :  { %v3367_v22 = vpop.permute.xlu1 %336  ;;  %v269_v23 = vpop.permute.xlu0 %268  ;;  %v315_v44 = vsel %vm314_vm3, %v302_v19, %v313_v36 }
  0xbf   :  { %v343_v24 = vrot.slane %v3367_v22, 4  ;;  %v276_v34 = vrot.slane %v269_v23, 4 }
  0xc1   :  { %v346_v33 = vsel %vm141_vm0, %v342_v25, %v343_v24 }
  0xc2   :  { %v3371_v28 = vpop.permute.xlu1 %270  ;;  %v3373_v29 = vpop.permute.xlu0 %369  ;;  %v348_v40 = vsel %vm347_vm2, %v335_v20, %v346_v33 }
  0xc3   :  { %v277_v31 = vrot.slane %v3371_v28, 4  ;;  %v376_v32 = vrot.slane %v3373_v29, 4  ;;  %v2951_v48 = vcombine.high %v315_v44, %v348_v40  ;;  %v2950_v54 = vcombine.low %v315_v44, %v348_v40 }
  0xc5   :  { %v379_v35 = vsel %vm141_vm0, %v375_v27, %v376_v32  ;;  %v280_v43 = vsel %vm141_vm0, %v276_v34, %v277_v31 }
  0xc6   :  { %v3386_v37 = vpop.permute.xlu1 %198  ;;  %v197_v38 = vpop.permute.xlu0 %196  ;;  %v381_v39 = vsel %vm380_vm1, %v368_v18, %v379_v35  ;;  %v282_v51 = vsel %vm281_vm4, %v269_v23, %v280_v43  ;;  %v3432_v23 = vld [vmem:[#allocation7] sm:$0xff]  }
  0xc7   :  { %v2957_v41 = vcombine.high %v381_v39, %v381_v39  ;;  %v2956_v42 = vcombine.low %v381_v39, %v381_v39  ;;  %v205_v45 = vrot.slane %v3386_v37, 4  ;;  %v204_v46 = vrot.slane %v197_v38, 4 }
  0xc8   :  { %v2945_v57 = vcombine.high %v3315_v4, %v282_v51  ;;  %v2944_v1 = vcombine.low %v3315_v4, %v282_v51 }
  0xc9   :  { %2962 = vmatprep.subr.msk.bf16.mxu0 %vm141_vm0, %v2957_v41  ;;  %v573_v47 = vsel %vm141_vm0, %v2956_v42, 0  ;;  %v208_v55 = vsel %vm141_vm0, %v204_v46, %v205_v45 }
  0xca   :  { %597 = vmatpush1.bf16.msra.mxu0 %v573_v47  ;;  %v3397_v49 = vpop.permute.xlu1 %231  ;;  %v230_v50 = vpop.permute.xlu0 %229  ;;  %v210_v63 = vsel %vm209_vm6, %v197_v38, %v208_v55 }
  0xcb   :  { %v238_v52 = vrot.slane %v3397_v49, 4  ;;  %v237_v53 = vrot.slane %v230_v50, 4  ;;  %598 = vmatprep.subr.bf16.mxu0 %v2951_v48  ;;  %v3473_v48 = vld [vmem:[#allocation7 + $0x8] sm:$0xff]  }
  0xcd   :  { %v241_v56 = vsel %vm141_vm0, %v237_v53, %v238_v52 }
  0xce   :  { %v243_v58 = vsel %vm242_vm5, %v230_v50, %v241_v56  ;;  %599 = vmatpush1.bf16.msra.mxu0 %v2950_v54  ;;  %v3409_v59 = vpop.permute.xlu1 %131  ;;  %v130_v60 = vpop.permute.xlu0 %129 }
  0xcf   :  { %v138_v61 = vrot.slane %v3409_v59, 4  ;;  %v137_v62 = vrot.slane %v130_v60, 4  ;;  %600 = vmatprep.subr.bf16.mxu0 %v2945_v57  ;;  %v2939_v2 = vcombine.high %v210_v63, %v243_v58  ;;  %v2938_v11 = vcombine.low %v210_v63, %v243_v58 }
  0xd1   :  { %v142_v7 = vsel %vm141_vm0, %v137_v62, %v138_v61 }
  0xd2   :  { %601 = vmatpush1.bf16.msra.mxu0 %v2944_v1  ;;  %v3414_v3 = vpop.permute.xlu1 %165  ;;  %v164_v6 = vpop.permute.xlu0 %163  ;;  %v144_v4 = vsel %vm143_vm7, %v130_v60, %v142_v7 }
  0xd3   :  { %v172_v9 = vrot.slane %v3414_v3, 4  ;;  %v171_v10 = vrot.slane %v164_v6, 4  ;;  %602 = vmatprep.subr.bf16.mxu0 %v2939_v2 }
  0xd5   :  { %v175_v12 = vsel %vm141_vm0, %v171_v10, %v172_v9 }
  0xd6   :  { %v177_v13 = vsel %vm176_vm8, %v164_v6, %v175_v12  ;;  %603 = vmatpush1.bf16.msra.mxu0 %v2938_v11  ;;  %v3423_v14 = vpop.permute.xlu1 %305  ;;  %v3425_v15 = vpop.permute.xlu0 %371 }
  0xd7   :  { %v311_v16 = vrot.slane %v3423_v14, 4  ;;  %v377_v17 = vrot.slane %v3425_v15, 4  ;;  %v2933_v18 = vcombine.high %v144_v4, %v177_v13  ;;  %v2932_v19 = vcombine.low %v144_v4, %v177_v13 }
  0xd9   :  { %v382_v20 = vsel %vm141_vm0, %v376_v32, %v377_v17  ;;  %604 = vmatprep.subr.bf16.mxu0 %v2933_v18  ;;  %v316_v33 = vsel %vm141_vm0, %v310_v26, %v311_v16 }
  0xda   :  { %v3434_v25 = vpop.permute.xlu1 %272  ;;  %605 = vmatpush1.bf16.msra.mxu0 %v2932_v19  ;;  %v3436_v27 = vpop.permute.xlu0 %338  ;;  %v383_v30 = vsel %vm380_vm1, %v3373_v29, %v382_v20  ;;  %v317_v41 = vsel %vm314_vm3, %v3365_v21, %v316_v33 }
  0xdb   :  { %v278_v32 = vrot.slane %v3434_v25, 4  ;;  %v344_v34 = vrot.slane %v3436_v27, 4  ;;  %v2959_v35 = vcombine.high %v383_v30, %v383_v30  ;;  %v2958_v36 = vcombine.low %v383_v30, %v383_v30 }
  0xdd   :  { %2963 = vmatmul.mubr.msk.bf16.vlgmr.msra.gmra.mxu0 %vm564_vm9, %v3432_v23  ;;  %2965 = vmatprep.subr.msk.bf16.mxu0 %vm141_vm0, %v2959_v35  ;;  %v579_v38 = vsel %vm141_vm0, %v2958_v36, 0  ;;  %v349_v29 = vsel %vm141_vm0, %v343_v24, %v344_v34  ;;  %v283_v26 = vsel %vm141_vm0, %v277_v31, %v278_v32 }
  0xde   :  { %v3459_v39 = vpop.permute.xlu1 %233  ;;  %650 = vmatpush1.bf16.msra.mxu0 %v579_v38  ;;  %v3461_v40 = vpop.permute.xlu0 %200  ;;  %v350_v42 = vsel %vm347_vm2, %v3367_v22, %v349_v29  ;;  %v284_v24 = vsel %vm281_vm4, %v3371_v28, %v283_v26  ;;  %632 = vmatprep.mubr.bf16.mxu0 %v4799_v0 }
  0xdf   :  { %v239_v43 = vrot.slane %v3459_v39, 4  ;;  %v206_v31 = vrot.slane %v3461_v40, 4  ;;  %v2952_v44 = vcombine.low %v317_v41, %v350_v42  ;;  %v2953_v46 = vcombine.high %v317_v41, %v350_v42 }
  0xe0   :  { %v2947_v47 = vcombine.high %v3321_v5, %v284_v24  ;;  %v2946_v55 = vcombine.low %v3321_v5, %v284_v24 }
  0xe1   :  { %651 = vmatprep.subr.bf16.mxu0 %v2953_v46  ;;  %v211_v21 = vsel %vm141_vm0, %v205_v45, %v206_v31  ;;  %v244_v22 = vsel %vm141_vm0, %v238_v52, %v239_v43 }
  0xe2   :  { %v3485_v28 = vpop.permute.xlu1 %167  ;;  %652 = vmatpush1.bf16.msra.mxu0 %v2952_v44  ;;  %v3487_v50 = vpop.permute.xlu0 %133  ;;  %v212_v51 = vsel %vm209_vm6, %v3386_v37, %v211_v21  ;;  %v245_v53 = vsel %vm242_vm5, %v3397_v49, %v244_v22  ;;  %v1722_v21 = vld [vmem:[#allocation2 + $0x7c] sm:$0xf]  ;;  %v775_v22 = vlaneseq }
  0xe3   :  { %v173_v54 = vrot.slane %v3485_v28, 4  ;;  %v139_v45 = vrot.slane %v3487_v50, 4  ;;  %653 = vmatprep.subr.bf16.mxu0 %v2947_v47  ;;  %v2941_v52 = vcombine.high %v212_v51, %v245_v53  ;;  %v2940_v62 = vcombine.low %v212_v51, %v245_v53  ;;  %1769 = vrot.lane.b32.xlu1 %v1722_v21, %s3254_s9 }
  0xe5   :  { %2964 = vmatmul.mubr.msk.bf16.gmra.mxu0 %vm564_vm9, %v3473_v48  ;;  %v145_v56 = vsel %vm141_vm0, %v138_v61, %v139_v45  ;;  %v178_v37 = vsel %vm141_vm0, %v172_v9, %v173_v54 }
  0xe6   :  { %v308_v57 = vpop.permute.xlu1 %307  ;;  %654 = vmatpush1.bf16.msra.mxu0 %v2946_v55  ;;  %v374_v49 = vpop.permute.xlu0 %373  ;;  %v146_v58 = vsel %vm143_vm7, %v3409_v59, %v145_v56  ;;  %v179_v60 = vsel %vm176_vm8, %v3414_v3, %v178_v37  ;;  %675 = vmatprep.mubr.bf16.mxu0 %v4799_v0 }
  0xe7   :  { %v378_v5 = vrot.slane %v374_v49, 4  ;;  %655 = vmatprep.subr.bf16.mxu0 %v2941_v52  ;;  %v312_v63 = vrot.slane %v308_v57, 4  ;;  %v2935_v61 = vcombine.high %v146_v58, %v179_v60  ;;  %v2934_v10 = vcombine.low %v146_v58, %v179_v60 }
  0xe9   :  { %v384_v1 = vsel %vm141_vm0, %v377_v17, %v378_v5  ;;  %v318_v3 = vsel %vm141_vm0, %v311_v16, %v312_v63 }
  0xea   :  { %v275_v2 = vpop.permute.xlu1 %274  ;;  %656 = vmatpush1.bf16.msra.mxu0 %v2940_v62  ;;  %v341_v6 = vpop.permute.xlu0 %340  ;;  %v385_v7 = vsel %vm380_vm1, %v3425_v15, %v384_v1  ;;  %v319_v16 = vsel %vm314_vm3, %v3423_v14, %v318_v3 }
  0xeb   :  { %v279_v9 = vrot.slane %v275_v2, 4  ;;  %v345_v59 = vrot.slane %v341_v6, 4  ;;  %657 = vmatprep.subr.bf16.mxu0 %v2935_v61  ;;  %v2961_v12 = vcombine.high %v385_v7, %v385_v7  ;;  %v2960_v4 = vcombine.low %v385_v7, %v385_v7 }
  0xed   :  { %v351_v11 = vsel %vm141_vm0, %v344_v34, %v345_v59  ;;  %v285_v15 = vsel %vm141_vm0, %v278_v32, %v279_v9  ;;  %v585_v30 = vsel %vm141_vm0, %v2960_v4, 0 }
  0xee   :  { %v236_v13 = vpop.permute.xlu1 %235  ;;  %658 = vmatpush1.bf16.msra.mxu0 %v2934_v10  ;;  %v203_v17 = vpop.permute.xlu0 %202  ;;  %v352_v18 = vsel %vm347_vm2, %v3436_v27, %v351_v11  ;;  %v286_v35 = vsel %vm281_vm4, %v3434_v25, %v285_v15 }
  0xef   :  { %v240_v19 = vrot.slane %v236_v13, 4  ;;  %v207_v20 = vrot.slane %v203_v17, 4  ;;  %2968 = vmatprep.subr.msk.bf16.mxu0 %vm141_vm0, %v2961_v12  ;;  %v2955_v33 = vcombine.high %v319_v16, %v352_v18  ;;  %v2954_v29 = vcombine.low %v319_v16, %v352_v18 }
  0xf0   :  { %v2949_v26 = vcombine.high %v3343_v8, %v286_v35 }
  0xf1   :  { %2966 = vmatmul.mubr.msk.bf16.vlgmr.msra.gmra.mxu0 %vm564_vm9, %v3432_v23  ;;  %v246_v32 = vsel %vm141_vm0, %v239_v43, %v240_v19  ;;  %v213_v14 = vsel %vm141_vm0, %v206_v31, %v207_v20  ;;  %v2948_v43 = vcombine.low %v3343_v8, %v286_v35  ;;  %v1718_v8 = vld [vmem:[#allocation2 + $0x5c] sm:$0xf] }
  0xf2   :  { %v170_v34 = vpop.permute.xlu1 %169  ;;  %703 = vmatpush1.bf16.msra.mxu0 %v585_v30  ;;  %v136_v27 = vpop.permute.xlu0 %135  ;;  %685 = vmatprep.mubr.bf16.mxu0 %v4799_v0  ;;  %v214_v25 = vsel %vm209_vm6, %v3461_v40, %v213_v14  ;;  %v247_v41 = vsel %vm242_vm5, %v3459_v39, %v246_v32 }
  0xf3   :  { %v174_v36 = vrot.slane %v170_v34, 4  ;;  %v140_v38 = vrot.slane %v136_v27, 4  ;;  %704 = vmatprep.subr.bf16.mxu0 %v2955_v33  ;;  %v2943_v31 = vcombine.high %v214_v25, %v247_v41  ;;  %v2942_v39 = vcombine.low %v214_v25, %v247_v41  ;;  %1761 = vrot.lane.b32.xlu0 %v1718_v8, %s3254_s9 }
  0xf5   :  { %v180_v42 = vsel %vm141_vm0, %v173_v54, %v174_v36  ;;  %v147_v24 = vsel %vm141_vm0, %v139_v45, %v140_v38 }
  0xf6   :  { %705 = vmatpush1.bf16.msra.mxu0 %v2954_v29  ;;  %v148_v44 = vsel %vm143_vm7, %v3487_v50, %v147_v24  ;;  %v181_v40 = vsel %vm176_vm8, %v3485_v28, %v180_v42  ;;  %v84_v28 = vld [vmem:[#allocation10] sm:$0x3f]  ;;  %v3556_v50 = vshrl.u32 %v775_v22, 7 }
  0xf7   :  { %706 = vmatprep.subr.bf16.mxu0 %v2949_v26  ;;  %v2937_v46 = vcombine.high %v148_v44, %v181_v40  ;;  %v2936_v47 = vcombine.low %v148_v44, %v181_v40  ;;  %vm773_vm10 = vcmp.gt.f32.partialorder %v84_v28, 0.0 }
  0xf8   :  { %v777_v51 = vsub.s32 0, %v3556_v50  ;;  %v781_v53 = vsub.s32 1, %v3556_v50  ;;  %v785_v13 = vsub.s32 2, %v3556_v50  ;;  %v789_v17 = vsub.s32 3, %v3556_v50 }
  0xf9   :  { %2967 = vmatmul.mubr.msk.bf16.gmra.mxu0 %vm564_vm9, %v3473_v48  ;;  %v793_v8 = vsub.s32 4, %v3556_v50 }
  0xfa   :  { %707 = vmatpush1.bf16.msra.mxu0 %v2948_v43  ;;  %728 = vmatprep.mubr.bf16.mxu0 %v4799_v0 }
  0xfb   :  { %708 = vmatprep.subr.bf16.mxu0 %v2943_v31 }
  0xfe   :  { %709 = vmatpush1.bf16.msra.mxu0 %v2942_v39 }
  0xff   :  { %710 = vmatprep.subr.bf16.mxu0 %v2937_v46 }
 0x102   :  { %711 = vmatpush1.bf16.msra.mxu0 %v2936_v47 }
 0x105   :  { %2969 = vmatmul.mubr.msk.bf16.vlgmr.msra.gmra.mxu0 %vm564_vm9, %v3432_v23  ;;  %v3560_v23 = vsel %vm773_vm10, 1, %v4799_v0  ;;  %vm2621_vm10 = vcmask 261120  }
 0x106   :  { %738 = vmatprep.mubr.bf16.mxu0 %v4799_v0  ;;  %v3567_v54 = vrot.slane %v3560_v23, %v781_v53  ;;  %v3602_v30 = vrot.slane %v3560_v23, %v785_v13  ;;  %v3605_v33 = vrot.slane %v3560_v23, %v789_v17  ;;  %v797_v53 = vsub.s32 5, %v3556_v50 }
 0x108   :  { %4882 = vst [vmem:[#allocation18_spill] sm:$0xff] %v3567_v54  ;;  %vm800_vm12 = vcmp.eq.s32.totalorder %v3567_v54, 1  ;;  %4883 = vst [vmem:[#allocation19_spill] sm:$0xff] %v3602_v30  ;;  %vm801_vm13 = vcmp.eq.s32.totalorder %v3602_v30, 1  ;;  %vm802_vm14 = vcmp.eq.s32.totalorder %v3605_v33, 1  ;;  %v3651_v50 = vrot.slane %v3560_v23, %v797_v53 }
 0x109   :  { %4884 = vst [vmem:[#allocation20_spill] sm:$0xff] %v3605_v33 }
 0x10a   :  { %4886 = vst [vmem:[#allocation22_spill] sm:$0xff] %v3651_v50 }
 0x10d   :  { %2970 = vmatmul.mubr.msk.bf16.gmra.mxu0 %vm564_vm9, %v3473_v48  ;;  %v3564_v48 = vrot.slane %v3560_v23, %v777_v51  ;;  %vm804_vm9 = vcmp.eq.s32.totalorder %v3651_v50, 1 }
 0x10f   :  { %4881 = vst [vmem:[#allocation17_spill] sm:$0xff] %v3564_v48  ;;  %vm799_vm11 = vcmp.eq.s32.totalorder %v3564_v48, 1 }
 0x19d   :  { %v624_v45 = vpop.f32.mrf.mxu0 }
 0x19e   :  { %v749_v55 = vmax.f32 %v624_v45, 0.0 }
 0x19f   :  { %v626_v52 = vpop.f32.mrf.mxu0 }
 0x1a0   :  { %v805_v56 = vsel %vm799_vm11, %v749_v55, 0.0  ;;  %v750_v37 = vmax.f32 %v626_v52, 0.0 }
 0x1a1   :  { %v628_v57 = vpop.f32.mrf.mxu0 }
 0x1a2   :  { %v806_v49 = vsel %vm800_vm12, %v750_v37, 0.0  ;;  %v755_v58 = vmax.f32 %v628_v57, 0.0 }
 0x1a3   :  { %v3575_v60 = vpack.c.bf16 %v806_v49, %v805_v56  ;;  %v630_v5 = vpop.f32.mrf.mxu0  ;;  %v3644_v56 = vrot.slane %v3560_v23, %v793_v8 }
 0x1a4   :  { %v756_v62 = vmax.f32 %v630_v5, 0.0  ;;  %v811_v1 = vsel %vm799_vm11, %v755_v58, 0.0 }
 0x1a5   :  { %901 = vst [vmem:[#allocation2 + $0x4] sm:$0xff] %v3575_v60  ;;  %v634_v63 = vpop.f32.mrf.mxu0  ;;  %4885 = vst [vmem:[#allocation21_spill] sm:$0xff] %v3644_v56  ;;  %vm803_vm15 = vcmp.eq.s32.totalorder %v3644_v56, 1 }
 0x1a6   :  { %v812_v61 = vsel %vm800_vm12, %v756_v62, 0.0  ;;  %v761_v2 = vmax.f32 %v634_v63, 0.0 }
 0x1a7   :  { %v3582_v6 = vpack.c.bf16 %v812_v61, %v811_v1  ;;  %v636_v7 = vpop.f32.mrf.mxu0 }
 0x1a8   :  { %v817_v9 = vsel %vm799_vm11, %v761_v2, 0.0  ;;  %v762_v59 = vmax.f32 %v636_v7, 0.0 }
 0x1a9   :  { %904 = vst [vmem:[#allocation2 + $0x24] sm:$0xff] %v3582_v6  ;;  %v638_v10 = vpop.f32.mrf.mxu0 }
 0x1aa   :  { %v818_v3 = vsel %vm800_vm12, %v762_v59, 0.0  ;;  %v767_v11 = vmax.f32 %v638_v10, 0.0 }
 0x1ab   :  { %v3589_v12 = vpack.c.bf16 %v818_v3, %v817_v9  ;;  %v640_v4 = vpop.f32.mrf.mxu0 }
 0x1ac   :  { %v768_v18 = vmax.f32 %v640_v4, 0.0  ;;  %v1299_v15 = vld [vmem:[#allocation2] sm:$0xff]  ;;  %v823_v19 = vsel %vm799_vm11, %v767_v11, 0.0 }
 0x1ad   :  { %907 = vst [vmem:[#allocation2 + $0x44] sm:$0xff] %v3589_v12  ;;  %1331 = vrot.lane.b32.xlu0 %v1299_v15, %s3257_s12 }
 0x1ae   :  { %v824_v20 = vsel %vm800_vm12, %v768_v18, 0.0 }
 0x1af   :  { %v3599_v16 = vpack.c.bf16 %v824_v20, %v823_v19 }
 0x1b0   :  { %v1303_v10 = vld [vmem:[#allocation2 + $0x20] sm:$0xff] }
 0x1b1   :  { %910 = vst [vmem:[#allocation2 + $0x64] sm:$0xff] %v3599_v16  ;;  %1203 = vrot.lane.b32.xlu0 %v1299_v15, %s3256_s11  ;;  %v677_v34 = vpop.f32.mrf.mxu0 }
 0x1b2   :  { %v751_v27 = vmax.f32 %v677_v34, 0.0 }
 0x1b3   :  { %v679_v35 = vpop.f32.mrf.mxu0 }
 0x1b4   :  { %v752_v32 = vmax.f32 %v679_v35, 0.0  ;;  %v807_v36 = vsel %vm801_vm13, %v751_v27, 0.0 }
 0x1b5   :  { %1075 = vrot.lane.b32.xlu0 %v1299_v15, %s3259_s14  ;;  %v681_v14 = vpop.f32.mrf.mxu0 }
 0x1b6   :  { %v808_v38 = vsel %vm802_vm14, %v752_v32, 0.0  ;;  %v757_v29 = vmax.f32 %v681_v14, 0.0 }
 0x1b7   :  { %v3616_v26 = vpack.c.bf16 %v808_v38, %v807_v36  ;;  %v683_v25 = vpop.f32.mrf.mxu0 }
 0x1b8   :  { %v758_v41 = vmax.f32 %v683_v25, 0.0  ;;  %v813_v24 = vsel %vm801_vm13, %v757_v29, 0.0  ;;  %v1307_v29 = vld [vmem:[#allocation2 + $0x40] sm:$0xff] }
 0x1b9   :  { %902 = vst [vmem:[#allocation2 + $0xc] sm:$0xff] %v3616_v26  ;;  %947 = vrot.lane.b32.xlu0 %v1299_v15, %s3258_s13  ;;  %v687_v42 = vpop.f32.mrf.mxu0 }
 0x1ba   :  { %v814_v43 = vsel %vm802_vm14, %v758_v41, 0.0  ;;  %v763_v31 = vmax.f32 %v687_v42, 0.0 }
 0x1bb   :  { %v3624_v44 = vpack.c.bf16 %v814_v43, %v813_v24  ;;  %v689_v40 = vpop.f32.mrf.mxu0 }
 0x1bc   :  { %v819_v39 = vsel %vm801_vm13, %v763_v31, 0.0  ;;  %v764_v46 = vmax.f32 %v689_v40, 0.0 }
 0x1bd   :  { %905 = vst [vmem:[#allocation2 + $0x2c] sm:$0xff] %v3624_v44  ;;  %1739 = vrot.lane.b32.xlu0 %v3575_v60, %s3254_s9  ;;  %v691_v47 = vpop.f32.mrf.mxu0 }
 0x1be   :  { %v820_v21 = vsel %vm802_vm14, %v764_v46, 0.0  ;;  %v769_v22 = vmax.f32 %v691_v47, 0.0 }
 0x1bf   :  { %v3634_v28 = vpack.c.bf16 %v820_v21, %v819_v39  ;;  %v693_v51 = vpop.f32.mrf.mxu0 }
 0x1c0   :  { %v825_v45 = vsel %vm801_vm13, %v769_v22, 0.0  ;;  %v770_v55 = vmax.f32 %v693_v51, 0.0  ;;  %v1300_v52 = vld [vmem:[#allocation2 + $0x8] sm:$0xff] }
 0x1c1   :  { %908 = vst [vmem:[#allocation2 + $0x4c] sm:$0xff] %v3634_v28  ;;  %1611 = vrot.lane.b32.xlu0 %v3575_v60, %s3253_s3  ;;  %1333 = vrot.lane.b32.xlu1 %v1300_v52, %s3257_s12 }
 0x1c2   :  { %v826_v37 = vsel %vm802_vm14, %v770_v55, 0.0 }
 0x1c3   :  { %v3648_v57 = vpack.c.bf16 %v826_v37, %v825_v45 }
 0x1c4   :  { %v1304_v38 = vld [vmem:[#allocation2 + $0x28] sm:$0xff] }
 0x1c5   :  { %911 = vst [vmem:[#allocation2 + $0x6c] sm:$0xff] %v3648_v57  ;;  %1483 = vrot.lane.b32.xlu0 %v3575_v60, %s3255_s10  ;;  %1205 = vrot.lane.b32.xlu1 %v1300_v52, %s3256_s11  ;;  %v730_v49 = vpop.f32.mrf.mxu0 }
 0x1c6   :  { %v753_v58 = vmax.f32 %v730_v49, 0.0 }
 0x1c7   :  { %v732_v5 = vpop.f32.mrf.mxu0 }
 0x1c8   :  { %v809_v62 = vsel %vm803_vm15, %v753_v58, 0.0  ;;  %v754_v63 = vmax.f32 %v732_v5, 0.0 }
 0x1c9   :  { %1867 = vrot.lane.b32.xlu0 %v3575_v60, %s3252_s2  ;;  %1077 = vrot.lane.b32.xlu1 %v1300_v52, %s3259_s14  ;;  %v734_v23 = vpop.f32.mrf.mxu0 }
 0x1ca   :  { %v810_v1 = vsel %vm804_vm9, %v754_v63, 0.0  ;;  %v759_v61 = vmax.f32 %v734_v23, 0.0 }
 0x1cb   :  { %v3666_v2 = vpack.c.bf16 %v810_v1, %v809_v62  ;;  %v736_v7 = vpop.f32.mrf.mxu0 }
 0x1cc   :  { %v815_v9 = vsel %vm803_vm15, %v759_v61, 0.0  ;;  %v760_v59 = vmax.f32 %v736_v7, 0.0  ;;  %v1312_v41 = vld [vmem:[#allocation2 + $0x68] sm:$0xff] }
 0x1cd   :  { %903 = vst [vmem:[#allocation2 + $0x14] sm:$0xff] %v3666_v2  ;;  %1339 = vrot.lane.b32.xlu0 %v1303_v10, %s3257_s12  ;;  %949 = vrot.lane.b32.xlu1 %v1300_v52, %s3258_s13  ;;  %v740_v60 = vpop.f32.mrf.mxu0 }
 0x1ce   :  { %v816_v3 = vsel %vm804_vm9, %v760_v59, 0.0  ;;  %v765_v11 = vmax.f32 %v740_v60, 0.0 }
 0x1cf   :  { %v3675_v4 = vpack.c.bf16 %v816_v3, %v815_v9  ;;  %v742_v13 = vpop.f32.mrf.mxu0 }
 0x1d0   :  { %v821_v17 = vsel %vm803_vm15, %v765_v11, 0.0  ;;  %v766_v18 = vmax.f32 %v742_v13, 0.0  ;;  %v3845_v11 = vld [vmem:[#allocation9] sm:$0xff] }
 0x1d1   :  { %906 = vst [vmem:[#allocation2 + $0x34] sm:$0xff] %v3675_v4  ;;  %1211 = vrot.lane.b32.xlu0 %v1303_v10, %s3256_s11  ;;  %1741 = vrot.lane.b32.xlu1 %v3616_v26, %s3254_s9  ;;  %v744_v15 = vpop.f32.mrf.mxu0  ;;  %4895 = vst [vmem:[#allocation31_spill] sm:$0xff] %v3845_v11  ;;  %v3851_v13 = vcombine.high %v3845_v11, %v3845_v11 }
 0x1d2   :  { %v822_v19 = vsel %vm804_vm9, %v766_v18, 0.0  ;;  %v771_v20 = vmax.f32 %v744_v15, 0.0 }
 0x1d3   :  { %v3685_v34 = vpack.c.bf16 %v822_v19, %v821_v17  ;;  %v746_v27 = vpop.f32.mrf.mxu0  ;;  %4896 = vst [vmem:[#allocation32_spill] sm:$0xff] %v3851_v13  ;;  %v1710_v17 = vld [vmem:[#allocation2 + $0x1c] sm:$0xf]  ;;  %2657 = vmatprep.mubr.bf16.mxu1 %v3851_v13  ;;  %2739 = vmatprep.mubr.bf16.mxu0 %v3851_v13 }
 0x1d4   :  { %v827_v35 = vsel %vm803_vm15, %v771_v20, 0.0  ;;  %v772_v32 = vmax.f32 %v746_v27, 0.0  ;;  %v1301_v31 = vld [vmem:[#allocation2 + $0x10] sm:$0xff]  ;;  %v1302_v46 = vld [vmem:[#allocation2 + $0x18] sm:$0xf] }
 0x1d5   :  { %1083 = vrot.lane.b32.xlu0 %v1303_v10, %s3259_s14  ;;  %1613 = vrot.lane.b32.xlu1 %v3616_v26, %s3253_s3  ;;  %909 = vst [vmem:[#allocation2 + $0x54] sm:$0xff] %v3685_v34  ;;  %v1174_v53 = vld [vmem:[#allocation2 + $0x18] sm:$0xf] }
 0x1d6   :  { %v828_v14 = vsel %vm804_vm9, %v772_v32, 0.0  ;;  %v1046_v37 = vld [vmem:[#allocation2 + $0x18] sm:$0xf] }
 0x1d7   :  { %v3695_v36 = vpack.c.bf16 %v828_v14, %v827_v35  ;;  %v918_v62 = vld [vmem:[#allocation2 + $0x18] sm:$0xf] }
 0x1d8   :  { %v1305_v45 = vld [vmem:[#allocation2 + $0x30] sm:$0xff]  ;;  %v1306_v63 = vld [vmem:[#allocation2 + $0x38] sm:$0xf] }
 0x1d9   :  { %955 = vrot.lane.b32.xlu0 %v1303_v10, %s3258_s13  ;;  %1485 = vrot.lane.b32.xlu1 %v3616_v26, %s3255_s10  ;;  %912 = vst [vmem:[#allocation2 + $0x74] sm:$0xff] %v3695_v36  ;;  %v1178_v9 = vld [vmem:[#allocation2 + $0x38] sm:$0xf] }
 0x1da   :  { %v1050_v60 = vld [vmem:[#allocation2 + $0x38] sm:$0xf] }
 0x1db   :  { %v922_v27 = vld [vmem:[#allocation2 + $0x38] sm:$0xf] }
 0x1dc   :  { %v1309_v3 = vld [vmem:[#allocation2 + $0x50] sm:$0xff] }
 0x1dd   :  { %1747 = vrot.lane.b32.xlu0 %v3582_v6, %s3254_s9  ;;  %1869 = vrot.lane.b32.xlu1 %v3616_v26, %s3252_s2  ;;  %v1311_v26 = vld [vmem:[#allocation2 + $0x60] sm:$0xff] }
 0x1e0   :  { %v1186_v50 = vld [vmem:[#allocation2 + $0x78] sm:$0xf] }
 0x1e1   :  { %1619 = vrot.lane.b32.xlu0 %v3582_v6, %s3253_s3  ;;  %1341 = vrot.lane.b32.xlu1 %v1304_v38, %s3257_s12  ;;  %v1058_v33 = vld [vmem:[#allocation2 + $0x78] sm:$0xf] }
 0x1e5   :  { %1491 = vrot.lane.b32.xlu0 %v3582_v6, %s3255_s10  ;;  %1213 = vrot.lane.b32.xlu1 %v1304_v38, %s3256_s11 }
 0x1e9   :  { %1875 = vrot.lane.b32.xlu0 %v3582_v6, %s3252_s2  ;;  %1085 = vrot.lane.b32.xlu1 %v1304_v38, %s3259_s14  ;;  %v1308_v6 = vld [vmem:[#allocation2 + $0x48] sm:$0xff] }
 0x1ed   :  { %1347 = vrot.lane.b32.xlu0 %v1307_v29, %s3257_s12  ;;  %957 = vrot.lane.b32.xlu1 %v1304_v38, %s3258_s13 }
 0x1f1   :  { %1219 = vrot.lane.b32.xlu0 %v1307_v29, %s3256_s11  ;;  %1749 = vrot.lane.b32.xlu1 %v3624_v44, %s3254_s9 }
 0x1f5   :  { %1091 = vrot.lane.b32.xlu0 %v1307_v29, %s3259_s14  ;;  %1621 = vrot.lane.b32.xlu1 %v3624_v44, %s3253_s3 }
 0x1f9   :  { %963 = vrot.lane.b32.xlu0 %v1307_v29, %s3258_s13  ;;  %1493 = vrot.lane.b32.xlu1 %v3624_v44, %s3255_s10  ;;  %v1310_v29 = vld [vmem:[#allocation2 + $0x58] sm:$0xf] }
 0x1fd   :  { %1755 = vrot.lane.b32.xlu0 %v3589_v12, %s3254_s9  ;;  %1877 = vrot.lane.b32.xlu1 %v3624_v44, %s3252_s2  ;;  %v3774_v44 = vpop.permute.xlu1 %1769 }
 0x1fe   :  { %4888 = vst [vmem:[#allocation24_spill] sm:$0xff] %v3774_v44 }
 0x201   :  { %1627 = vrot.lane.b32.xlu0 %v3589_v12, %s3253_s3  ;;  %1349 = vrot.lane.b32.xlu1 %v1308_v6, %s3257_s12 }
 0x205   :  { %1499 = vrot.lane.b32.xlu0 %v3589_v12, %s3255_s10  ;;  %1221 = vrot.lane.b32.xlu1 %v1308_v6, %s3256_s11 }
 0x209   :  { %1883 = vrot.lane.b32.xlu0 %v3589_v12, %s3252_s2  ;;  %1093 = vrot.lane.b32.xlu1 %v1308_v6, %s3259_s14  ;;  %v3749_v12 = vpop.permute.xlu0 %1761 }
 0x20a   :  { %4887 = vst [vmem:[#allocation23_spill] sm:$0xff] %v3749_v12 }
 0x20d   :  { %1355 = vrot.lane.b32.xlu0 %v1311_v26, %s3257_s12  ;;  %965 = vrot.lane.b32.xlu1 %v1308_v6, %s3258_s13 }
 0x211   :  { %1227 = vrot.lane.b32.xlu0 %v1311_v26, %s3256_s11  ;;  %1757 = vrot.lane.b32.xlu1 %v3634_v28, %s3254_s9 }
 0x215   :  { %1099 = vrot.lane.b32.xlu0 %v1311_v26, %s3259_s14  ;;  %1629 = vrot.lane.b32.xlu1 %v3634_v28, %s3253_s3 }
 0x219   :  { %971 = vrot.lane.b32.xlu0 %v1311_v26, %s3258_s13  ;;  %1501 = vrot.lane.b32.xlu1 %v3634_v28, %s3255_s10 }
 0x21d   :  { %1763 = vrot.lane.b32.xlu0 %v3599_v16, %s3254_s9  ;;  %1885 = vrot.lane.b32.xlu1 %v3634_v28, %s3252_s2 }
 0x21f   :  { %v3755_v25 = vpop.permute.xlu0 %1331 }
 0x221   :  { %1635 = vrot.lane.b32.xlu0 %v3599_v16, %s3253_s3  ;;  %1357 = vrot.lane.b32.xlu1 %v1312_v41, %s3257_s12 }
 0x223   :  { %v3760_v42 = vpop.permute.xlu0 %1203 }
 0x225   :  { %1507 = vrot.lane.b32.xlu0 %v3599_v16, %s3255_s10  ;;  %1229 = vrot.lane.b32.xlu1 %v1312_v41, %s3256_s11 }
 0x227   :  { %v3765_v24 = vpop.permute.xlu0 %1075 }
 0x229   :  { %1891 = vrot.lane.b32.xlu0 %v3599_v16, %s3252_s2  ;;  %1101 = vrot.lane.b32.xlu1 %v1312_v41, %s3259_s14 }
 0x22b   :  { %v3770_v43 = vpop.permute.xlu0 %947 }
 0x22d   :  { %973 = vrot.lane.b32.xlu1 %v1312_v41, %s3258_s13  ;;  %1335 = vrot.lane.b32.xlu0 %v1301_v31, %s3257_s12  ;;  %v1313_v41 = vld [vmem:[#allocation2 + $0x70] sm:$0xff] }
 0x22f   :  { %v3776_v40 = vpop.permute.xlu0 %1739 }
 0x231   :  { %1765 = vrot.lane.b32.xlu1 %v3648_v57, %s3254_s9  ;;  %1207 = vrot.lane.b32.xlu0 %v1301_v31, %s3256_s11 }
 0x233   :  { %v3781_v39 = vpop.permute.xlu1 %1333  ;;  %v3783_v16 = vpop.permute.xlu0 %1611 }
 0x234   :  { %4889 = vst [vmem:[#allocation25_spill] sm:$0xff] %v3781_v39 }
 0x235   :  { %1637 = vrot.lane.b32.xlu1 %v3648_v57, %s3253_s3  ;;  %1079 = vrot.lane.b32.xlu0 %v1301_v31, %s3259_s14 }
 0x237   :  { %v3788_v47 = vpop.permute.xlu1 %1205  ;;  %v3790_v8 = vpop.permute.xlu0 %1483 }
 0x238   :  { %4890 = vst [vmem:[#allocation26_spill] sm:$0xff] %v3790_v8 }
 0x239   :  { %1509 = vrot.lane.b32.xlu1 %v3648_v57, %s3255_s10  ;;  %1337 = vrot.lane.b32.xlu0 %v1302_v46, %s3257_s12 }
 0x23b   :  { %v3795_v21 = vpop.permute.xlu1 %1077  ;;  %v3797_v22 = vpop.permute.xlu0 %1867 }
 0x23c   :  { %4891 = vst [vmem:[#allocation27_spill] sm:$0xff] %v3797_v22 }
 0x23d   :  { %1893 = vrot.lane.b32.xlu1 %v3648_v57, %s3252_s2  ;;  %951 = vrot.lane.b32.xlu0 %v1301_v31, %s3258_s13  ;;  %v1714_v31 = vld [vmem:[#allocation2 + $0x3c] sm:$0xf] }
 0x23f   :  { %v3802_v28 = vpop.permute.xlu1 %949  ;;  %v3804_v51 = vpop.permute.xlu0 %1339 }
 0x240   :  { %v1367_v13 = vrot.slane %v3804_v51, 4 }
 0x241   :  { %1209 = vrot.lane.b32.xlu0 %v1174_v53, %s3256_s11  ;;  %1343 = vrot.lane.b32.xlu1 %v1305_v45, %s3257_s12 }
 0x243   :  { %v3808_v55 = vpop.permute.xlu1 %1741  ;;  %v3810_v52 = vpop.permute.xlu0 %1211 }
 0x245   :  { %1081 = vrot.lane.b32.xlu0 %v1046_v37, %s3259_s14  ;;  %1215 = vrot.lane.b32.xlu1 %v1305_v45, %s3256_s11 }
 0x247   :  { %v3814_v57 = vpop.permute.xlu1 %1613  ;;  %v3816_v49 = vpop.permute.xlu0 %1083 }
 0x249   :  { %1743 = vrot.lane.b32.xlu0 %v3666_v2, %s3254_s9  ;;  %1087 = vrot.lane.b32.xlu1 %v1305_v45, %s3259_s14 }
 0x24b   :  { %v3821_v58 = vpop.permute.xlu1 %1485  ;;  %v3823_v5 = vpop.permute.xlu0 %955 }
 0x24c   :  { %4892 = vst [vmem:[#allocation28_spill] sm:$0xff] %v3821_v58 }
 0x24d   :  { %953 = vrot.lane.b32.xlu0 %v918_v62, %s3258_s13  ;;  %1345 = vrot.lane.b32.xlu1 %v1306_v63, %s3257_s12  ;;  %v1054_v63 = vld [vmem:[#allocation2 + $0x58] sm:$0xf] }
 0x24f   :  { %v3827_v23 = vpop.permute.xlu1 %1869  ;;  %v3829_v1 = vpop.permute.xlu0 %1747 }
 0x250   :  { %4893 = vst [vmem:[#allocation29_spill] sm:$0xff] %v3827_v23 }
 0x251   :  { %1615 = vrot.lane.b32.xlu0 %v3666_v2, %s3253_s3  ;;  %959 = vrot.lane.b32.xlu1 %v1305_v45, %s3258_s13  ;;  %v1182_v45 = vld [vmem:[#allocation2 + $0x58] sm:$0xf] }
 0x253   :  { %v3834_v61 = vpop.permute.xlu1 %1341  ;;  %v3836_v7 = vpop.permute.xlu0 %1619 }
 0x254   :  { %4894 = vst [vmem:[#allocation30_spill] sm:$0xff] %v3834_v61 }
 0x255   :  { %1487 = vrot.lane.b32.xlu0 %v3666_v2, %s3255_s10  ;;  %1217 = vrot.lane.b32.xlu1 %v1178_v9, %s3256_s11 }
 0x257   :  { %v3841_v59 = vpop.permute.xlu1 %1213  ;;  %v3843_v10 = vpop.permute.xlu0 %1491 }
 0x259   :  { %1089 = vrot.lane.b32.xlu1 %v1050_v60, %s3259_s14  ;;  %1351 = vrot.lane.b32.xlu0 %v1309_v3, %s3257_s12 }
 0x25b   :  { %v3853_v18 = vpop.permute.xlu1 %1085  ;;  %v3855_v15 = vpop.permute.xlu0 %1875 }
 0x25c   :  { %4897 = vst [vmem:[#allocation33_spill] sm:$0xff] %v3855_v15  ;;  %v4905_v15 = vrot.slane %v3834_v61, 4  ;;  %v1594_v61 = vld [vmem:[#allocation2 + $0x7c] sm:$0xf] }
 0x25d   :  { %1751 = vrot.lane.b32.xlu1 %v3675_v4, %s3254_s9  ;;  %1745 = vrot.lane.b32.xlu0 %v1710_v17, %s3254_s9 }
 0x25e   :  { %v1385_v23 = vsel %vm141_vm0, %v1367_v13, %v4905_v15  ;;  %v4907_v15 = vrot.slane %v3781_v39, 4 }
 0x25f   :  { %v3862_v19 = vpop.permute.xlu1 %957  ;;  %v3864_v20 = vpop.permute.xlu0 %1347 }
 0x261   :  { %961 = vrot.lane.b32.xlu1 %v922_v27, %s3258_s13  ;;  %1223 = vrot.lane.b32.xlu0 %v1309_v3, %s3256_s11  ;;  %v1314_v27 = vld [vmem:[#allocation2 + $0x78] sm:$0xf] }
 0x263   :  { %v3868_v35 = vpop.permute.xlu1 %1749  ;;  %v3870_v32 = vpop.permute.xlu0 %1219 }
 0x264   :  { %v1243_v8 = vrot.slane %v3870_v32, 4 }
 0x265   :  { %1623 = vrot.lane.b32.xlu1 %v3675_v4, %s3253_s3  ;;  %1095 = vrot.lane.b32.xlu0 %v1309_v3, %s3259_s14 }
 0x267   :  { %v3875_v14 = vpop.permute.xlu1 %1621  ;;  %v3877_v38 = vpop.permute.xlu0 %1091 }
 0x269   :  { %1495 = vrot.lane.b32.xlu1 %v3675_v4, %s3255_s10  ;;  %1353 = vrot.lane.b32.xlu0 %v1310_v29, %s3257_s12  ;;  %v926_v29 = vld [vmem:[#allocation2 + $0x58] sm:$0xf] }
 0x26b   :  { %v3882_v6 = vpop.permute.xlu1 %1493  ;;  %v3884_v26 = vpop.permute.xlu0 %963 }
 0x26c   :  { %4898 = vst [vmem:[#allocation34_spill] sm:$0xff] %v3882_v6 }
 0x26d   :  { %1359 = vrot.lane.b32.xlu1 %v1313_v41, %s3257_s12  ;;  %967 = vrot.lane.b32.xlu0 %v1309_v3, %s3258_s13 }
 0x26f   :  { %v3888_v46 = vpop.permute.xlu1 %1877  ;;  %v3890_v53 = vpop.permute.xlu0 %1755 }
 0x270   :  { %4899 = vst [vmem:[#allocation35_spill] sm:$0xff] %v3888_v46 }
 0x271   :  { %1753 = vrot.lane.b32.xlu1 %v1714_v31, %s3254_s9  ;;  %1225 = vrot.lane.b32.xlu0 %v1182_v45, %s3256_s11 }
 0x273   :  { %v3894_v37 = vpop.permute.xlu1 %1349  ;;  %v3896_v62 = vpop.permute.xlu0 %1627 }
 0x274   :  { %4900 = vst [vmem:[#allocation36_spill] sm:$0xff] %v3894_v37 }
 0x275   :  { %1231 = vrot.lane.b32.xlu1 %v1313_v41, %s3256_s11  ;;  %1097 = vrot.lane.b32.xlu0 %v1054_v63, %s3259_s14 }
 0x277   :  { %v3900_v9 = vpop.permute.xlu1 %1221  ;;  %v3902_v60 = vpop.permute.xlu0 %1499 }
 0x279   :  { %1103 = vrot.lane.b32.xlu1 %v1313_v41, %s3259_s14  ;;  %1759 = vrot.lane.b32.xlu0 %v3685_v34, %s3254_s9 }
 0x27b   :  { %v3907_v3 = vpop.permute.xlu1 %1093  ;;  %v3909_v17 = vpop.permute.xlu0 %1883 }
 0x27c   :  { %4901 = vst [vmem:[#allocation37_spill] sm:$0xff] %v3909_v17 }
 0x27d   :  { %1361 = vrot.lane.b32.xlu1 %v1314_v27, %s3257_s12  ;;  %969 = vrot.lane.b32.xlu0 %v926_v29, %s3258_s13  ;;  %v1590_v27 = vld [vmem:[#allocation2 + $0x5c] sm:$0xf] }
 0x27f   :  { %v3913_v31 = vpop.permute.xlu1 %965  ;;  %v1356_v45 = vpop.permute.xlu0 %1355 }
 0x280   :  { %v1375_v17 = vrot.slane %v1356_v45, 4 }
 0x281   :  { %975 = vrot.lane.b32.xlu1 %v1313_v41, %s3258_s13  ;;  %1631 = vrot.lane.b32.xlu0 %v3685_v34, %s3253_s3  ;;  %v1582_v41 = vld [vmem:[#allocation2 + $0x1c] sm:$0xf] }
 0x283   :  { %v3918_v63 = vpop.permute.xlu1 %1757  ;;  %v3920_v0 = vpop.permute.xlu0 %1227 }
 0x285   :  { %1233 = vrot.lane.b32.xlu1 %v1186_v50, %s3256_s11  ;;  %1503 = vrot.lane.b32.xlu0 %v3685_v34, %s3255_s10  ;;  %v1462_v50 = vld [vmem:[#allocation2 + $0x5c] sm:$0xf] }
 0x287   :  { %v3925_v29 = vpop.permute.xlu1 %1629  ;;  %v3927_v56 = vpop.permute.xlu0 %1099 }
 0x289   :  { %1105 = vrot.lane.b32.xlu1 %v1058_v33, %s3259_s14  ;;  %1633 = vrot.lane.b32.xlu0 %v1590_v27, %s3253_s3  ;;  %v930_v27 = vld [vmem:[#allocation2 + $0x78] sm:$0xf]  ;;  %v1363_v33 = vrot.slane %v3755_v25, 4 }
 0x28b   :  { %v3931_v30 = vpop.permute.xlu1 %1501  ;;  %v3933_v54 = vpop.permute.xlu0 %971 }
 0x28c   :  { %4902 = vst [vmem:[#allocation38_spill] sm:$0xff] %v3931_v30 }
 0x28d   :  { %1767 = vrot.lane.b32.xlu1 %v3695_v36, %s3254_s9  ;;  %1617 = vrot.lane.b32.xlu0 %v1582_v41, %s3253_s3  ;;  %v1371_v41 = vrot.slane %v3864_v20, 4 }
 0x28f   :  { %v3939_v44 = vpop.permute.xlu1 %1885  ;;  %v3941_v12 = vpop.permute.xlu0 %1763 }
 0x290   :  { %4903 = vst [vmem:[#allocation39_spill] sm:$0xff] %v3939_v44  ;;  %v1454_v44 = vld [vmem:[#allocation2 + $0x1c] sm:$0xf] }
 0x291   :  { %977 = vrot.lane.b32.xlu1 %v930_v27, %s3258_s13  ;;  %1505 = vrot.lane.b32.xlu0 %v1462_v50, %s3255_s10  ;;  %v4906_v27 = vrot.slane %v3894_v37, 4  ;;  %v1379_v37 = vsel %vm141_vm0, %v1363_v33, %v4907_v15 }
 0x293   :  { %v3949_v22 = vpop.permute.xlu1 %1357  ;;  %v3951_v48 = vpop.permute.xlu0 %1635  ;;  %v1391_v50 = vsel %vm141_vm0, %v1371_v41, %v4906_v27  ;;  %v1386_v41 = vsel %vm242_vm5, %v3804_v51, %v1385_v23  ;;  %v4826_v51 = vrot.slane %v3788_v47, 4  ;;  %v1380_v23 = vsel %vm242_vm5, %v3755_v25, %v1379_v37 }
 0x294   :  { %4904 = vst [vmem:[#allocation40_spill] sm:$0xff] %v3949_v22  ;;  %v4822_v46 = vrot.slane %v3949_v22, 4  ;;  %v1392_v22 = vsel %vm242_vm5, %v3864_v20, %v1391_v50  ;;  %v1239_v27 = vrot.slane %v3810_v52, 4  ;;  %v4908_v20 = vrot.slane %v3900_v9, 4 }
 0x295   :  { %1639 = vrot.lane.b32.xlu1 %v3695_v36, %s3253_s3  ;;  %1887 = vrot.lane.b32.xlu0 %v3685_v34, %s3252_s2 }
 0x296   :  { %v1397_v13 = vsel %vm141_vm0, %v1375_v17, %v4822_v46  ;;  %v1247_v46 = vrot.slane %v3920_v0, 4 }
 0x297   :  { %v3976_v34 = vpop.permute.xlu1 %1229  ;;  %v3978_v11 = vpop.permute.xlu0 %1507  ;;  %v1398_v17 = vsel %vm242_vm5, %v1356_v45, %v1397_v13  ;;  %v1263_v45 = vsel %vm141_vm0, %v1243_v8, %v4908_v20  ;;  %v4909_v8 = vrot.slane %v3841_v59, 4 }
 0x298   :  { %v4825_v33 = vrot.slane %v3976_v34, 4  ;;  %v3029_v15 = vcombine.high %v1392_v22, %v1398_v17  ;;  %v3028_v39 = vcombine.low %v1392_v22, %v1398_v17  ;;  %v3023_v22 = vcombine.high %v1380_v23, %v1386_v41 }
 0x299   :  { %1641 = vrot.lane.b32.xlu1 %v1594_v61, %s3253_s3  ;;  %1489 = vrot.lane.b32.xlu0 %v1454_v44, %s3255_s10  ;;  %v1235_v44 = vrot.slane %v3760_v42, 4  ;;  %v1257_v17 = vsel %vm141_vm0, %v1239_v27, %v4909_v8 }
 0x29a   :  { %v1269_v50 = vsel %vm141_vm0, %v1247_v46, %v4825_v33  ;;  %2625 = vmatprep.subr.bf16.mxu1 %v3029_v15  ;;  %v1264_v46 = vsel %vm209_vm6, %v3870_v32, %v1263_v45  ;;  %v1119_v15 = vrot.slane %v3927_v56, 4  ;;  %v1466_v32 = vld [vmem:[#allocation2 + $0x7c] sm:$0xf] }
 0x29b   :  { %v3997_v13 = vpop.permute.xlu1 %1101  ;;  %2626 = vmatpush1.bf16.msra.mxu1 %v3028_v39  ;;  %v3999_v61 = vpop.permute.xlu0 %1891  ;;  %v1270_v25 = vsel %vm209_vm6, %v3920_v0, %v1269_v50  ;;  %v3022_v39 = vcombine.low %v1380_v23, %v1386_v41  ;;  %v4828_v0 = vrot.slane %v3907_v3, 4  ;;  %v1586_v50 = vld [vmem:[#allocation2 + $0x3c] sm:$0xf]  ;;  %v1251_v27 = vsel %vm141_vm0, %v1235_v44, %v4826_v51 }
 0x29c   :  { %v4827_v37 = vrot.slane %v3997_v13, 4  ;;  %2627 = vmatprep.subr.bf16.mxu1 %v3023_v22  ;;  %v3017_v20 = vcombine.high %v1264_v46, %v1270_v25  ;;  %v1846_v22 = vld [vmem:[#allocation2 + $0x5c] sm:$0xf]  ;;  %v1115_v41 = vrot.slane %v3877_v38, 4  ;;  %v3016_v45 = vcombine.low %v1264_v46, %v1270_v25 }
 0x29d   :  { %1511 = vrot.lane.b32.xlu1 %v3695_v36, %s3255_s10  ;;  %1871 = vrot.lane.b32.xlu0 %v3666_v2, %s3252_s2  ;;  %v1258_v2 = vsel %vm209_vm6, %v3810_v52, %v1257_v17  ;;  %v1252_v44 = vsel %vm209_vm6, %v3760_v42, %v1251_v27  ;;  %v1111_v52 = vrot.slane %v3816_v49, 4  ;;  %v1107_v42 = vrot.slane %v3765_v24, 4 }
 0x29e   :  { %v1141_v23 = vsel %vm141_vm0, %v1119_v15, %v4827_v37  ;;  %v1135_v17 = vsel %vm141_vm0, %v1115_v41, %v4828_v0  ;;  %v3011_v51 = vcombine.high %v1252_v44, %v1258_v2  ;;  %v1838_v15 = vld [vmem:[#allocation2 + $0x1c] sm:$0xf]  ;;  %v3010_v41 = vcombine.low %v1252_v44, %v1258_v2 }
 0x29f   :  { %v4019_v8 = vpop.permute.xlu1 %973  ;;  %2628 = vmatpush1.bf16.msra.mxu1 %v3022_v39  ;;  %v4021_v33 = vpop.permute.xlu0 %1335  ;;  %v4829_v39 = vrot.slane %v3795_v21, 4  ;;  %v1142_v25 = vsel %vm176_vm8, %v3927_v56, %v1141_v23  ;;  %v4844_v37 = vrot.slane %v3913_v31, 4  ;;  %v991_v56 = vrot.slane %v3933_v54, 4  ;;  %v1458_v0 = vld [vmem:[#allocation2 + $0x3c] sm:$0xf] }
 0x2a0   :  { %2629 = vmatprep.subr.bf16.mxu1 %v3017_v20  ;;  %v987_v44 = vrot.slane %v3884_v26, 4 }
 0x2a1   :  { %1625 = vrot.lane.b32.xlu1 %v1586_v50, %s3253_s3  ;;  %1889 = vrot.lane.b32.xlu0 %v1846_v22, %s3252_s2  ;;  %v4910_v22 = vrot.slane %v3853_v18, 4 }
 0x2a3   :  { %v4039_v20 = vpop.permute.xlu1 %1765  ;;  %2630 = vmatpush1.bf16.msra.mxu1 %v3016_v45  ;;  %v4041_v50 = vpop.permute.xlu0 %1207  ;;  %v1129_v27 = vsel %vm141_vm0, %v1111_v52, %v4910_v22  ;;  %v1136_v45 = vsel %vm176_vm8, %v3877_v38, %v1135_v17  ;;  %v4831_v38 = vrot.slane %v3862_v19, 4  ;;  %v4911_v52 = vrot.slane %v4019_v8, 4 }
 0x2a4   :  { %2631 = vmatprep.subr.bf16.mxu1 %v3011_v51  ;;  %v3005_v23 = vcombine.high %v1136_v45, %v1142_v25  ;;  %v1123_v51 = vsel %vm141_vm0, %v1107_v42, %v4829_v39  ;;  %v1130_v2 = vsel %vm176_vm8, %v3816_v49, %v1129_v27  ;;  %v4830_v22 = vrot.slane %v3802_v28, 4 }
 0x2a5   :  { %1513 = vrot.lane.b32.xlu1 %v1466_v32, %s3255_s10  ;;  %1873 = vrot.lane.b32.xlu0 %v1838_v15, %s3252_s2  ;;  %v1013_v17 = vsel %vm141_vm0, %v991_v56, %v4911_v52  ;;  %v3004_v15 = vcombine.low %v1136_v45, %v1142_v25  ;;  %v1124_v42 = vsel %vm176_vm8, %v3765_v24, %v1123_v51  ;;  %v979_v25 = vrot.slane %v3770_v43, 4 }
 0x2a6   :  { %v1007_v49 = vsel %vm141_vm0, %v987_v44, %v4844_v37  ;;  %v2999_v27 = vcombine.high %v1124_v42, %v1130_v2  ;;  %v4832_v24 = vrot.slane %v4039_v20, 4  ;;  %v4834_v44 = vrot.slane %v3918_v63, 4  ;;  %v4916_v37 = vld [vmem:[#allocation39_spill] sm:$0xff] }
 0x2a7   :  { %v4059_v46 = vpop.permute.xlu1 %1637  ;;  %2632 = vmatpush1.bf16.msra.mxu1 %v3010_v41  ;;  %v4061_v32 = vpop.permute.xlu0 %1079  ;;  %v983_v41 = vrot.slane %v3823_v5, 4  ;;  %v1008_v51 = vsel %vm143_vm7, %v3884_v26, %v1007_v49  ;;  %v1779_v26 = vrot.slane %v3890_v53, 4 }
 0x2a8   :  { %2633 = vmatprep.subr.bf16.mxu1 %v3005_v23  ;;  %v2998_v23 = vcombine.low %v1124_v42, %v1130_v2  ;;  %v4835_v2 = vrot.slane %v3868_v35, 4 }
 0x2a9   :  { %1497 = vrot.lane.b32.xlu1 %v1458_v0, %s3255_s10  ;;  %v1014_v0 = vsel %vm143_vm7, %v3933_v54, %v1013_v17  ;;  %v1001_v45 = vsel %vm141_vm0, %v983_v41, %v4831_v38  ;;  %v1783_v54 = vrot.slane %v3941_v12, 4  ;;  %v995_v17 = vsel %vm141_vm0, %v979_v25, %v4830_v22  ;;  %v1850_v22 = vld [vmem:[#allocation2 + $0x7c] sm:$0xf] }
 0x2aa   :  { %v2993_v52 = vcombine.high %v1008_v51, %v1014_v0  ;;  %v2992_v49 = vcombine.low %v1008_v51, %v1014_v0  ;;  %v4833_v25 = vrot.slane %v3808_v55, 4  ;;  %v4836_v0 = vrot.slane %v4059_v46, 4 }
 0x2ab   :  { %v4078_v39 = vpop.permute.xlu1 %1509  ;;  %2634 = vmatpush1.bf16.msra.mxu1 %v3004_v15  ;;  %v4080_v56 = vpop.permute.xlu0 %1337  ;;  %v1805_v42 = vsel %vm141_vm0, %v1783_v54, %v4832_v24 }
 0x2ac   :  { %4912 = vst [vmem:[#allocation41_spill] sm:$0xff] %v4078_v39  ;;  %2635 = vmatprep.subr.bf16.mxu1 %v2999_v27  ;;  %v996_v27 = vsel %vm143_vm7, %v3770_v43, %v995_v17  ;;  %v1771_v43 = vrot.slane %v3776_v40, 4 }
 0x2ad   :  { %1895 = vrot.lane.b32.xlu1 %v3695_v36, %s3252_s2  ;;  %v1002_v36 = vsel %vm143_vm7, %v3823_v5, %v1001_v45  ;;  %v1775_v5 = vrot.slane %v3829_v1, 4  ;;  %v1799_v45 = vsel %vm141_vm0, %v1779_v26, %v4834_v44  ;;  %v4838_v26 = vrot.slane %v3925_v29, 4 }
 0x2ae   :  { %v1800_v17 = vsel %vm347_vm2, %v3890_v53, %v1799_v45  ;;  %v4839_v53 = vrot.slane %v3875_v14, 4  ;;  %v4837_v45 = vrot.slane %v3814_v57, 4  ;;  %v1643_v44 = vrot.slane %v3783_v16, 4 }
 0x2af   :  { %v4098_v15 = vpop.permute.xlu1 %1893  ;;  %2636 = vmatpush1.bf16.msra.mxu1 %v2998_v23  ;;  %v4100_v41 = vpop.permute.xlu0 %951  ;;  %v2987_v23 = vcombine.high %v996_v27, %v1002_v36  ;;  %v1793_v51 = vsel %vm141_vm0, %v1775_v5, %v4835_v2 }
 0x2b0   :  { %4913 = vst [vmem:[#allocation42_spill] sm:$0xff] %v4098_v15  ;;  %2637 = vmatprep.subr.bf16.mxu1 %v2993_v52  ;;  %v2986_v52 = vcombine.low %v996_v27, %v1002_v36  ;;  %v1651_v36 = vrot.slane %v3896_v62, 4 }
 0x2b1   :  { %1879 = vrot.lane.b32.xlu1 %v3675_v4, %s3252_s2  ;;  %v1806_v4 = vsel %vm347_vm2, %v3941_v12, %v1805_v42  ;;  %v1842_v42 = vld [vmem:[#allocation2 + $0x3c] sm:$0xf] }
 0x2b2   :  { %v3077_v12 = vcombine.high %v1800_v17, %v1806_v4 }
 0x2b3   :  { %v4118_v38 = vpop.permute.xlu1 %1343  ;;  %2638 = vmatpush1.bf16.msra.mxu1 %v2992_v49  ;;  %v4120_v54 = vpop.permute.xlu0 %1209  ;;  %v1655_v49 = vrot.slane %v3951_v48, 4 }
 0x2b4   :  { %2639 = vmatprep.subr.bf16.mxu1 %v2987_v23  ;;  %v1787_v23 = vsel %vm141_vm0, %v1771_v43, %v4833_v25  ;;  %v3076_v43 = vcombine.low %v1800_v17, %v1806_v4  ;;  %v1647_v25 = vrot.slane %v3836_v7, 4  ;;  %v4840_v17 = vrot.slane %v4078_v39, 4 }
 0x2b5   :  { %1897 = vrot.lane.b32.xlu1 %v1850_v22, %s3252_s2  ;;  %v1794_v22 = vsel %vm347_vm2, %v3829_v1, %v1793_v51  ;;  %v1677_v27 = vsel %vm141_vm0, %v1655_v49, %v4836_v0  ;;  %v1671_v1 = vsel %vm141_vm0, %v1651_v36, %v4838_v26  ;;  %v1659_v36 = vsel %vm141_vm0, %v1643_v44, %v4837_v45 }
 0x2b6   :  { %v1678_v4 = vsel %vm314_vm3, %v3951_v48, %v1677_v27  ;;  %v1527_v48 = vrot.slane %v3978_v11, 4  ;;  %v4848_v27 = vrot.slane %v4021_v33, 4  ;;  %v1523_v0 = vrot.slane %v3902_v60, 4 }
 0x2b7   :  { %v4137_v24 = vpop.permute.xlu1 %1215  ;;  %2640 = vmatpush1.bf16.msra.mxu1 %v2986_v52  ;;  %v4139_v5 = vpop.permute.xlu0 %1081  ;;  %v1788_v52 = vsel %vm347_vm2, %v3776_v40, %v1787_v23  ;;  %v1366_v40 = vrot.slane %v4080_v56, 4  ;;  %v1672_v23 = vsel %vm314_vm3, %v3896_v62, %v1671_v1  ;;  %v4849_v1 = vrot.slane %v4118_v38, 4 }
 0x2b8   :  { %2641 = vmatprep.subr.bf16.mxu1 %v3077_v12  ;;  %v3071_v51 = vcombine.high %v1788_v52, %v1794_v22  ;;  %v1665_v12 = vsel %vm141_vm0, %v1647_v25, %v4839_v53  ;;  %v3065_v56 = vcombine.high %v1672_v23, %v1678_v4  ;;  %v1549_v44 = vsel %vm141_vm0, %v1527_v48, %v4840_v17  ;;  %v4914_v17 = vld [vmem:[#allocation26_spill] sm:$0xff] }
 0x2b9   :  { %1881 = vrot.lane.b32.xlu1 %v1842_v42, %s3252_s2  ;;  %v3070_v42 = vcombine.low %v1788_v52, %v1794_v22  ;;  %v1666_v62 = vsel %vm314_vm3, %v3836_v7, %v1665_v12  ;;  %v1383_v52 = vsel %vm141_vm0, %v4848_v27, %v1366_v40  ;;  %v4843_v26 = vrot.slane %v3821_v58, 4  ;;  %v4918_v27 = vld [vmem:[#allocation37_spill] sm:$0xff] }
 0x2ba   :  { %v1660_v53 = vsel %vm314_vm3, %v3783_v16, %v1659_v36  ;;  %v1519_v7 = vrot.slane %v3843_v10, 4  ;;  %v1550_v16 = vsel %vm281_vm4, %v3978_v11, %v1549_v44  ;;  %v1238_v36 = vrot.slane %v4120_v54, 4  ;;  %v1433_v11 = vld [vmem:[#allocation2 + $0x44] sm:$0xff] }
 0x2bb   :  { %v4157_v2 = vpop.permute.xlu1 %1087  ;;  %2642 = vmatpush2.bf16.msra.mxu1 %v3076_v43  ;;  %v4159_v49 = vpop.permute.xlu0 %1743  ;;  %v4841_v43 = vrot.slane %v3931_v30, 4  ;;  %v3059_v48 = vcombine.high %v1660_v53, %v1666_v62  ;;  %v3058_v44 = vcombine.low %v1660_v53, %v1666_v62  ;;  %v1110_v54 = vrot.slane %v4139_v5, 4  ;;  %v4919_v58 = vld [vmem:[#allocation29_spill] sm:$0xff] }
 0x2bc   :  { %2643 = vmatprep.subr.bf16.mxu1 %v3071_v51  ;;  %v4842_v51 = vrot.slane %v3882_v6, 4  ;;  %v4847_v53 = vrot.slane %v4137_v24, 4 }
 0x2bd   :  { %v1543_v12 = vsel %vm141_vm0, %v1523_v0, %v4841_v43 }
 0x2bf   :  { %v1346_v25 = vpop.permute.xlu1 %1345  ;;  %2644 = vmatpush2.bf16.msra.mxu1 %v3070_v42  ;;  %v4178_v22 = vpop.permute.xlu0 %953  ;;  %v3064_v42 = vcombine.low %v1672_v23, %v1678_v4  ;;  %v4208_v23 = vsel %vm242_vm5, %v4021_v33, %v1383_v52  ;;  %v1544_v52 = vsel %vm281_vm4, %v3902_v60, %v1543_v12  ;;  %v4845_v12 = vrot.slane %v4061_v32, 4 }
 0x2c0   :  { %v1370_v45 = vrot.slane %v1346_v25, 4  ;;  %2645 = vmatprep.subr.bf16.mxu1 %v3065_v56  ;;  %v1515_v25 = vrot.slane %v4914_v17, 4  ;;  %v3053_v43 = vcombine.high %v1544_v52, %v1550_v16 }
 0x2c2   :  { %v1389_v40 = vsel %vm141_vm0, %v4849_v1, %v1370_v45  ;;  %v1537_v45 = vsel %vm141_vm0, %v1519_v7, %v4842_v51  ;;  %v1531_v7 = vsel %vm141_vm0, %v1515_v25, %v4843_v26  ;;  %v3052_v25 = vcombine.low %v1544_v52, %v1550_v16 }
 0x2c3   :  { %v4200_v56 = vpop.permute.xlu1 %959  ;;  %2646 = vmatpush2.bf16.msra.mxu1 %v3064_v42  ;;  %v4202_v4 = vpop.permute.xlu0 %1615  ;;  %v4212_v0 = vsel %vm242_vm5, %v4118_v38, %v1389_v40  ;;  %v4846_v40 = vrot.slane %v4041_v50, 4  ;;  %v1538_v42 = vsel %vm281_vm4, %v3843_v10, %v1537_v45  ;;  %v1532_v5 = vsel %vm281_vm4, %v4914_v17, %v1531_v7 }
 0x2c4   :  { %2647 = vmatprep.subr.bf16.mxu1 %v3059_v48  ;;  %v3047_v26 = vcombine.high %v1532_v5, %v1538_v42  ;;  %v4861_v10 = vrot.slane %v4098_v15, 4  ;;  %v1127_v45 = vsel %vm141_vm0, %v4845_v12, %v1110_v54  ;;  %v4850_v52 = vrot.slane %v4157_v2, 4 }
 0x2c5   :  { %v1255_v60 = vsel %vm141_vm0, %v4846_v40, %v1238_v36  ;;  %v1907_v1 = vrot.slane %v4918_v27, 4  ;;  %v4921_v15 = vrot.slane %v4916_v37, 4 }
 0x2c6   :  { %v4251_v16 = vsel %vm209_vm6, %v4041_v50, %v1255_v60  ;;  %v1911_v60 = vrot.slane %v3999_v61, 4 }
 0x2c7   :  { %v1218_v48 = vpop.permute.xlu1 %1217  ;;  %2648 = vmatpush2.bf16.msra.mxu1 %v3058_v44  ;;  %v4229_v51 = vpop.permute.xlu0 %1487 }
 0x2c8   :  { %4915 = vst [vmem:[#allocation26_spill] sm:$0xff] %v4229_v51  ;;  %v1242_v62 = vrot.slane %v1218_v48, 4  ;;  %2649 = vmatprep.subr.bf16.mxu1 %v3053_v43  ;;  %v1436_v48 = vld [vmem:[#allocation2 + $0x64] sm:$0xff] }
 0x2c9   :  { %v3041_v40 = vcombine.high %v1433_v11, %v1436_v48 }
 0x2ca   :  { %v1261_v44 = vsel %vm141_vm0, %v4847_v53, %v1242_v62  ;;  %v1430_v53 = vld [vmem:[#allocation2 + $0x24] sm:$0xff] }
 0x2cb   :  { %v1090_v36 = vpop.permute.xlu1 %1089  ;;  %2650 = vmatpush2.bf16.msra.mxu1 %v3052_v25  ;;  %v4247_v43 = vpop.permute.xlu0 %1351  ;;  %v4255_v17 = vsel %vm209_vm6, %v4137_v24, %v1261_v44  ;;  %v3046_v25 = vcombine.low %v1532_v5, %v1538_v42  ;;  %v4275_v42 = vsel %vm176_vm8, %v4061_v32, %v1127_v45  ;;  %v3040_v45 = vcombine.low %v1433_v11, %v1436_v48 }
 0x2cc   :  { %v1114_v7 = vrot.slane %v1090_v36, 4  ;;  %2651 = vmatprep.subr.bf16.mxu1 %v3047_v26  ;;  %v4917_v36 = vld [vmem:[#allocation35_spill] sm:$0xff]  ;;  %v1427_v26 = vld [vmem:[#allocation2 + $0x4] sm:$0xff] }
 0x2cd   :  { %v3035_v39 = vcombine.high %v1427_v26, %v1430_v53  ;;  %v4923_v48 = vrot.slane %v4917_v36, 4  ;;  %v3034_v37 = vcombine.low %v1427_v26, %v1430_v53  ;;  %v4924_v36 = vld [vmem:[#allocation31_spill] sm:$0xff] }
 0x2ce   :  { %v1133_v44 = vsel %vm141_vm0, %v4850_v52, %v1114_v7  ;;  %v1933_v7 = vsel %vm141_vm0, %v1911_v60, %v4861_v10  ;;  %v982_v52 = vrot.slane %v4178_v22, 4  ;;  %v1927_v60 = vsel %vm141_vm0, %v1907_v1, %v4921_v15 }
 0x2cf   :  { %v4269_v54 = vpop.permute.xlu1 %1751  ;;  %2652 = vmatpush2.bf16.msra.mxu1 %v3046_v25  ;;  %v4271_v62 = vpop.permute.xlu0 %1745  ;;  %v4279_v5 = vsel %vm176_vm8, %v4157_v2, %v1133_v44  ;;  %v4920_v44 = vld [vmem:[#allocation33_spill] sm:$0xff]  ;;  %v4865_v22 = vrot.slane %v4100_v41, 4  ;;  %v1934_v11 = vsel %vm380_vm1, %v3999_v61, %v1933_v7  ;;  %v4866_v15 = vrot.slane %v4200_v56, 4 }
 0x2d0   :  { %2653 = vmatprep.subr.bf16.mxu1 %v3041_v40  ;;  %v1903_v6 = vrot.slane %v4920_v44, 4  ;;  %v4922_v40 = vld [vmem:[#allocation27_spill] sm:$0xff] }
 0x2d1   :  { %v1899_v10 = vrot.slane %v4922_v40, 4  ;;  %v999_v30 = vsel %vm141_vm0, %v4865_v22, %v982_v52 }
 0x2d2   :  { %v1921_v12 = vsel %vm141_vm0, %v1903_v6, %v4923_v48  ;;  %v4314_v6 = vcombine.low %v4924_v36, %v4924_v36  ;;  %v4926_v48 = vrot.slane %v4919_v58, 4 }
 0x2d3   :  { %v962_v51 = vpop.permute.xlu1 %961  ;;  %2654 = vmatpush2.bf16.msra.mxu1 %v3040_v45  ;;  %v4296_v25 = vpop.permute.xlu0 %1223  ;;  %v1928_v45 = vsel %vm380_vm1, %v4918_v27, %v1927_v60  ;;  %v1922_v27 = vsel %vm380_vm1, %v4920_v44, %v1921_v12  ;;  %v4929_v60 = vmov 0  }
 0x2d4   :  { %v986_v1 = vrot.slane %v962_v51, 4  ;;  %2655 = vmatprep.subr.bf16.mxu1 %v3035_v39  ;;  %v3089_v7 = vcombine.high %v1928_v45, %v1934_v11  ;;  %4925 = vst [vmem:[#allocation37_spill] sm:$0xff] %v4314_v6  ;;  %v1915_v52 = vsel %vm141_vm0, %v1899_v10, %v4926_v48  ;;  %v4327_v51 = vsel %vm143_vm7, %v4100_v41, %v999_v30 }
 0x2d5   :  { %4927 = vst [vmem:[#allocation33_spill] sm:$0xff] %v4327_v51  ;;  %v3088_v36 = vcombine.low %v1928_v45, %v1934_v11  ;;  %v1916_v26 = vsel %vm380_vm1, %v4922_v40, %v1915_v52  ;;  %v4931_v11 = vrot.slane %v4118_v38, 4  ;;  %v4932_v45 = vld [vmem:[#allocation30_spill] sm:$0xff]  ;;  %v1774_v52 = vrot.slane %v4271_v62, 4 }
 0x2d6   :  { %v1005_v61 = vsel %vm141_vm0, %v4866_v15, %v986_v1  ;;  %v3083_v12 = vcombine.high %v1916_v26, %v1922_v27  ;;  %v4870_v1 = vrot.slane %v4247_v43, 4  ;;  %v4933_v40 = vrot.slane %v4932_v45, 4 }
 0x2d7   :  { %v4319_v22 = vpop.permute.xlu1 %1623  ;;  %2656 = vmatpush2.bf16.msra.mxu1 %v3034_v37  ;;  %v4321_v39 = vpop.permute.xlu0 %1095  ;;  %v4331_v53 = vsel %vm143_vm7, %v4200_v56, %v1005_v61  ;;  %v3082_v61 = vcombine.low %v1916_v26, %v1922_v27  ;;  %v4876_v37 = vrot.slane %v4159_v49, 4 }
 0x2d8   :  { %4928 = vst [vmem:[#allocation27_spill] sm:$0xff] %v4331_v53  ;;  %2678 = vmatprep.subr.bf16.mxu1 %v3089_v7  ;;  %v4346_v7 = vld [vmem:[#allocation9 + $0x8] ss:$0 sps:$4 sm:$0xff]   ;;  %v1387_v48 = vsel %vm141_vm0, %v4933_v40, %v4931_v11  ;;  %v4936_v11 = vrot.slane %v4021_v33, 4  ;;  %v4937_v40 = vld [vmem:[#allocation25_spill] sm:$0xff] }
 0x2d9   :  { %4930 = vst [vmem:[#allocation31_spill] sm:$0xff] %v4346_v7  ;;  %v4938_v62 = vrot.slane %v4937_v40, 4  ;;  %v1388_v58 = vsel %vm242_vm5, %v4932_v45, %v1387_v48  ;;  %v1791_v33 = vsel %vm141_vm0, %v4876_v37, %v1774_v52  ;;  %v1245_v45 = vrot.slane %v4296_v25, 4 }
 0x2da   :  { %2658 = vmatmul.mubr.bf16.vlgmr.msra.gmra.mxu1 %v4314_v6  ;;  %v4942_v52 = vrot.slane %v4269_v54, 4 }
 0x2db   :  { %v4340_v30 = vpop.permute.xlu1 %1495  ;;  %2679 = vmatpush1.bf16.msra.mxu1 %v3088_v36  ;;  %v4342_v44 = vpop.permute.xlu0 %1353  ;;  %2698 = vmatprep.mubr.bf16.mxu1 %v4929_v60  ;;  %v1381_v15 = vsel %vm141_vm0, %v4938_v62, %v4936_v11 }
 0x2dc   :  { %2680 = vmatprep.subr.bf16.mxu1 %v3083_v12  ;;  %v4934_v12 = vld [vmem:[#allocation36_spill] sm:$0xff]  ;;  %v1382_v53 = vsel %vm242_vm5, %v4937_v40, %v1381_v15  ;;  %v4407_v15 = vsel %vm347_vm2, %v4159_v49, %v1791_v33  ;;  %v4949_v33 = vrot.slane %v3907_v3, 4 }
 0x2dd   :  { %v4935_v27 = vrot.slane %v4934_v12, 4  ;;  %v3025_v51 = vcombine.high %v1382_v53, %v1388_v58 }
 0x2df   :  { %v4354_v10 = vpop.permute.xlu1 %1359  ;;  %2681 = vmatpush1.bf16.msra.mxu1 %v3082_v61  ;;  %v4356_v36 = vpop.permute.xlu0 %967  ;;  %v1393_v26 = vsel %vm141_vm0, %v4935_v27, %v4870_v1  ;;  %v4939_v61 = vld [vmem:[#allocation40_spill] sm:$0xff] }
 0x2e0   :  { %v4871_v38 = vrot.slane %v4354_v10, 4  ;;  %v4940_v60 = vrot.slane %v4939_v61, 4  ;;  %v1394_v62 = vsel %vm242_vm5, %v4934_v12, %v1393_v26  ;;  %v4943_v12 = vrot.slane %v4137_v24, 4 }
 0x2e1   :  { %v4945_v24 = vrot.slane %v3900_v9, 4 }
 0x2e2   :  { %v1399_v6 = vsel %vm141_vm0, %v4940_v60, %v4871_v38  ;;  %3094 = vmatmul.mubr.msk.bf16.vlgmr.msra.gmra.mxu1 %vm2621_vm10, %v4346_v7  ;;  %v4941_v38 = vld [vmem:[#allocation32_spill] sm:$0xff] }
 0x2e3   :  { %v1754_v1 = vpop.permute.xlu1 %1753  ;;  %v4383_v11 = vpop.permute.xlu0 %1225  ;;  %v1400_v60 = vsel %vm242_vm5, %v4939_v61, %v1399_v6  ;;  %2821 = vmatprep.mubr.bf16.mxu1 %v4941_v38  ;;  %v4944_v6 = vrot.slane %v3841_v59, 4  ;;  %v1265_v61 = vsel %vm141_vm0, %v4945_v24, %v1245_v45 }
 0x2e4   :  { %v1778_v48 = vrot.slane %v1754_v1, 4  ;;  %v3030_v7 = vcombine.low %v1394_v62, %v1400_v60  ;;  %v3031_v27 = vcombine.high %v1394_v62, %v1400_v60  ;;  %v3024_v62 = vcombine.low %v1382_v53, %v1388_v58 }
 0x2e5   :  { %v1259_v26 = vsel %vm141_vm0, %v4944_v6, %v4943_v12  ;;  %v4946_v60 = vrot.slane %v4041_v50, 4  ;;  %v4948_v12 = vrot.slane %v3976_v34, 4  ;;  %v1266_v58 = vsel %vm209_vm6, %v3900_v9, %v1265_v61 }
 0x2e6   :  { %v1797_v37 = vsel %vm141_vm0, %v4942_v52, %v1778_v48  ;;  %2707 = vmatprep.subr.bf16.mxu0 %v3031_v27  ;;  %v4880_v52 = vrot.slane %v4321_v39, 4  ;;  %v1260_v53 = vsel %vm209_vm6, %v3841_v59, %v1259_v26 }
 0x2e7   :  { %v4401_v38 = vpop.permute.xlu1 %1231  ;;  %2708 = vmatpush1.bf16.msra.mxu0 %v3030_v7  ;;  %v4403_v1 = vpop.permute.xlu0 %1097  ;;  %v4411_v40 = vsel %vm347_vm2, %v4269_v54, %v1797_v37  ;;  %v4947_v37 = vrot.slane %v3788_v47, 4 }
 0x2e8   :  { %v1249_v27 = vrot.slane %v4401_v38, 4  ;;  %2709 = vmatprep.subr.bf16.mxu0 %v3025_v51  ;;  %v1137_v9 = vsel %vm141_vm0, %v4949_v33, %v4880_v52 }
 0x2e9   :  { %v1253_v48 = vsel %vm141_vm0, %v4947_v37, %v4946_v60  ;;  %v1374_v60 = vrot.slane %v4342_v44, 4 }
 0x2ea   :  { %v1271_v51 = vsel %vm141_vm0, %v4948_v12, %v1249_v27 }
 0x2eb   :  { %v4434_v6 = vpop.permute.xlu1 %1103  ;;  %2710 = vmatpush1.bf16.msra.mxu0 %v3024_v62  ;;  %v4436_v24 = vpop.permute.xlu0 %1759  ;;  %v1272_v50 = vsel %vm209_vm6, %v3976_v34, %v1271_v51  ;;  %v1254_v62 = vsel %vm209_vm6, %v3788_v47, %v1253_v48  ;;  %v4950_v34 = vrot.slane %v3997_v13, 4  ;;  %v4951_v48 = vrot.slane %v4157_v2, 4 }
 0x2ec   :  { %v4879_v37 = vrot.slane %v4434_v6, 4  ;;  %v3018_v7 = vcombine.low %v1266_v58, %v1272_v50  ;;  %v3019_v12 = vcombine.high %v1266_v58, %v1272_v50  ;;  %v3013_v44 = vcombine.high %v1254_v62, %v1260_v53 }
 0x2ed   :  { %v4952_v51 = vrot.slane %v3853_v18, 4  ;;  %v4953_v58 = vrot.slane %v4247_v43, 4 }
 0x2ee   :  { %v1143_v59 = vsel %vm141_vm0, %v4950_v34, %v4879_v37  ;;  %2711 = vmatprep.subr.bf16.mxu0 %v3019_v12  ;;  %v3012_v12 = vcombine.low %v1254_v62, %v1260_v53  ;;  %v4954_v37 = vrot.slane %v4061_v32, 4  ;;  %v1246_v62 = vrot.slane %v4383_v11, 4 }
 0x2ef   :  { %v1362_v26 = vpop.permute.xlu1 %1361  ;;  %2712 = vmatpush1.bf16.msra.mxu0 %v3018_v7  ;;  %v4458_v61 = vpop.permute.xlu0 %969  ;;  %v1144_v47 = vsel %vm176_vm8, %v3997_v13, %v1143_v59  ;;  %v1131_v33 = vsel %vm141_vm0, %v4952_v51, %v4951_v48  ;;  %v1395_v50 = vsel %vm141_vm0, %v4953_v58, %v1374_v60  ;;  %v1138_v7 = vsel %vm176_vm8, %v3907_v3, %v1137_v9 }
 0x2f0   :  { %v1378_v34 = vrot.slane %v1362_v26, 4  ;;  %2713 = vmatprep.subr.bf16.mxu0 %v3013_v44  ;;  %v4955_v13 = vrot.slane %v3795_v21, 4  ;;  %v989_v59 = vrot.slane %v4356_v36, 4  ;;  %v4956_v48 = vrot.slane %v4354_v10, 4 }
 0x2f1   :  { %v3007_v52 = vcombine.high %v1138_v7, %v1144_v47  ;;  %v1396_v3 = vsel %vm242_vm5, %v4247_v43, %v1395_v50  ;;  %v3006_v58 = vcombine.low %v1138_v7, %v1144_v47  ;;  %v4957_v43 = vrot.slane %v3913_v31, 4 }
 0x2f2   :  { %v1125_v2 = vsel %vm141_vm0, %v4955_v13, %v4954_v37  ;;  %v1401_v51 = vsel %vm141_vm0, %v4956_v48, %v1378_v34  ;;  %v1132_v37 = vsel %vm176_vm8, %v3853_v18, %v1131_v33  ;;  %v4958_v18 = vrot.slane %v4019_v8, 4 }
 0x2f3   :  { %v4481_v60 = vpop.permute.xlu1 %975  ;;  %2714 = vmatpush1.bf16.msra.mxu0 %v3012_v12  ;;  %v4483_v53 = vpop.permute.xlu0 %1631  ;;  %v1402_v32 = vsel %vm242_vm5, %v4354_v10, %v1401_v51  ;;  %v1126_v34 = vsel %vm176_vm8, %v3795_v21, %v1125_v2  ;;  %v1009_v10 = vsel %vm141_vm0, %v4957_v43, %v989_v59  ;;  %v4959_v50 = vrot.slane %v4200_v56, 4 }
 0x2f4   :  { %v993_v9 = vrot.slane %v4481_v60, 4  ;;  %2715 = vmatprep.subr.bf16.mxu0 %v3007_v52  ;;  %v3032_v44 = vcombine.low %v1396_v3, %v1402_v32  ;;  %v3033_v26 = vcombine.high %v1396_v3, %v1402_v32  ;;  %v3001_v52 = vcombine.high %v1126_v34, %v1132_v37 }
 0x2f5   :  { %v4960_v12 = vrot.slane %v3862_v19, 4  ;;  %v1267_v13 = vsel %vm141_vm0, %v1245_v45, %v1246_v62  ;;  %v4961_v48 = vcombine.high %v4208_v23, %v4212_v0  ;;  %v3000_v51 = vcombine.low %v1126_v34, %v1132_v37 }
 0x2f6   :  { %v1015_v11 = vsel %vm141_vm0, %v4958_v18, %v993_v9  ;;  %2789 = vmatprep.subr.bf16.mxu1 %v3033_v26  ;;  %v4962_v56 = vrot.slane %v4100_v41, 4  ;;  %v4963_v3 = vrot.slane %v3802_v28, 4  ;;  %v4964_v37 = vcombine.low %v4208_v23, %v4212_v0 }
 0x2f7   :  { %v1234_v33 = vpop.permute.xlu1 %1233  ;;  %2716 = vmatpush1.bf16.msra.mxu0 %v3006_v58  ;;  %2790 = vmatpush1.bf16.msra.mxu1 %v3032_v44  ;;  %v4505_v47 = vpop.permute.xlu0 %1503  ;;  %v1016_v21 = vsel %vm143_vm7, %v4019_v8, %v1015_v11  ;;  %v1003_v7 = vsel %vm141_vm0, %v4960_v12, %v4959_v50  ;;  %v1010_v8 = vsel %vm143_vm7, %v3913_v31, %v1009_v10  ;;  %v1118_v44 = vrot.slane %v4403_v1, 4 }
 0x2f8   :  { %v1250_v2 = vrot.slane %v1234_v33, 4  ;;  %2717 = vmatprep.subr.bf16.mxu0 %v3001_v52  ;;  %2791 = vmatprep.subr.bf16.mxu1 %v4961_v48  ;;  %v997_v32 = vsel %vm141_vm0, %v4963_v3, %v4962_v56  ;;  %v2995_v62 = vcombine.high %v1010_v8, %v1016_v21  ;;  %v1268_v41 = vsel %vm209_vm6, %v4296_v25, %v1267_v13 }
 0x2f9   :  { %v1004_v1 = vsel %vm143_vm7, %v3862_v19, %v1003_v7  ;;  %v1781_v10 = vrot.slane %v4436_v24, 4  ;;  %v2994_v18 = vcombine.low %v1010_v8, %v1016_v21  ;;  %v998_v23 = vsel %vm143_vm7, %v3802_v28, %v997_v32 }
 0x2fa   :  { %v1273_v45 = vsel %vm141_vm0, %v1249_v27, %v1250_v2  ;;  %v4965_v0 = vrot.slane %v4321_v39, 4  ;;  %v4966_v11 = vrot.slane %v4434_v6, 4  ;;  %v2989_v19 = vcombine.high %v998_v23, %v1004_v1 }
 0x2fb   :  { %v1106_v26 = vpop.permute.xlu1 %1105  ;;  %2718 = vmatpush1.bf16.msra.mxu0 %v3000_v51  ;;  %2792 = vmatpush1.bf16.msra.mxu1 %v4964_v37  ;;  %v4534_v31 = vpop.permute.xlu0 %1633  ;;  %v1274_v58 = vsel %vm209_vm6, %v4401_v38, %v1273_v45  ;;  %v4967_v21 = vrot.slane %v4269_v54, 4  ;;  %v4968_v28 = vrot.slane %v3868_v35, 4  ;;  %v4969_v7 = vcombine.high %v4251_v16, %v4255_v17 }
 0x2fc   :  { %v1122_v34 = vrot.slane %v1106_v26, 4  ;;  %2719 = vmatprep.subr.bf16.mxu0 %v2995_v62  ;;  %v3020_v27 = vcombine.low %v1268_v41, %v1274_v58  ;;  %v3021_v43 = vcombine.high %v1268_v41, %v1274_v58  ;;  %v1139_v25 = vsel %vm141_vm0, %v4965_v0, %v1118_v44 }
 0x2fd   :  { %v1795_v50 = vsel %vm141_vm0, %v4968_v28, %v4967_v21  ;;  %v4970_v13 = vrot.slane %v3918_v63, 4  ;;  %v2988_v54 = vcombine.low %v998_v23, %v1004_v1  ;;  %v1140_v48 = vsel %vm176_vm8, %v4321_v39, %v1139_v25 }
 0x2fe   :  { %v1145_v38 = vsel %vm141_vm0, %v4966_v11, %v1122_v34  ;;  %2793 = vmatprep.subr.bf16.mxu1 %v3021_v43  ;;  %v990_v51 = vrot.slane %v4458_v61, 4  ;;  %v4971_v8 = vrot.slane %v4039_v20, 4  ;;  %v4972_v32 = vrot.slane %v4159_v49, 4 }
 0x2ff   :  { %v4551_v52 = vpop.permute.xlu1 %1767  ;;  %2720 = vmatpush1.bf16.msra.mxu0 %v2994_v18  ;;  %2794 = vmatpush1.bf16.msra.mxu1 %v3020_v27  ;;  %v1146_v33 = vsel %vm176_vm8, %v4434_v6, %v1145_v38  ;;  %v1801_v2 = vsel %vm141_vm0, %v4970_v13, %v1781_v10  ;;  %v4569_v6 = vpop.permute.xlu0 %1617  ;;  %v4973_v44 = vrot.slane %v3808_v55, 4  ;;  %v4974_v26 = vcombine.low %v4251_v16, %v4255_v17 }
 0x300   :  { %v1785_v12 = vrot.slane %v4551_v52, 4  ;;  %2721 = vmatprep.subr.bf16.mxu0 %v2989_v19  ;;  %2795 = vmatprep.subr.bf16.mxu1 %v4969_v7  ;;  %v3009_v3 = vcombine.high %v1140_v48, %v1146_v33  ;;  %v1796_v61 = vsel %vm347_vm2, %v3868_v35, %v1795_v50  ;;  %v1649_v37 = vrot.slane %v4319_v22, 4  ;;  %v4979_v19 = vld [vmem:[#allocation24_spill] sm:$0xff] }
 0x301   :  { %v1789_v45 = vsel %vm141_vm0, %v4973_v44, %v4972_v32  ;;  %v1653_v49 = vrot.slane %v4483_v53, 4  ;;  %v1802_v58 = vsel %vm347_vm2, %v3918_v63, %v1801_v2  ;;  %v3008_v1 = vcombine.low %v1140_v48, %v1146_v33 }
 0x302   :  { %v1807_v56 = vsel %vm141_vm0, %v4971_v8, %v1785_v12  ;;  %v1645_v16 = vrot.slane %v4202_v4, 4  ;;  %v1790_v17 = vsel %vm347_vm2, %v3808_v55, %v1789_v45  ;;  %v4976_v55 = vrot.slane %v3925_v29, 4 }
 0x303   :  { %v978_v62 = vpop.permute.xlu1 %977  ;;  %2722 = vmatpush1.bf16.msra.mxu0 %v2988_v54  ;;  %2796 = vmatpush1.bf16.msra.mxu1 %v4974_v26  ;;  %v1808_v39 = vsel %vm347_vm2, %v4039_v20, %v1807_v56  ;;  %v1011_v20 = vsel %vm141_vm0, %v989_v59, %v990_v51  ;;  %v4602_v43 = vpop.permute.xlu0 %1505  ;;  %v3073_v18 = vcombine.high %v1790_v17, %v1796_v61  ;;  %v4975_v59 = vrot.slane %v3875_v14, 4  ;;  %v4983_v26 = vld [vmem:[#allocation26_spill] sm:$0xff] }
 0x304   :  { %v994_v41 = vrot.slane %v978_v62, 4  ;;  %2797 = vmatprep.subr.bf16.mxu1 %v3009_v3  ;;  %v3078_v34 = vcombine.low %v1802_v58, %v1808_v39  ;;  %v3079_v27 = vcombine.high %v1802_v58, %v1808_v39  ;;  %v4977_v11 = vcombine.high %v4275_v42, %v4279_v5  ;;  %v4984_v58 = vld [vmem:[#allocation34_spill] sm:$0xff] }
 0x305   :  { %v1667_v0 = vsel %vm141_vm0, %v4975_v59, %v1649_v37  ;;  %v1786_v33 = vrot.slane %v4979_v19, 4  ;;  %v1012_v21 = vsel %vm143_vm7, %v4356_v36, %v1011_v20  ;;  %v4980_v28 = vrot.slane %v3814_v57, 4 }
 0x306   :  { %v1017_v35 = vsel %vm141_vm0, %v993_v9, %v994_v41  ;;  %2723 = vmatprep.subr.bf16.mxu0 %v3079_v27  ;;  %v1673_v9 = vsel %vm141_vm0, %v4976_v55, %v1653_v49  ;;  %v4981_v7 = vrot.slane %v4059_v46, 4  ;;  %v3072_v2 = vcombine.low %v1790_v17, %v1796_v61 }
 0x307   :  { %v4604_v63 = vpop.permute.xlu1 %1639  ;;  %2798 = vmatpush1.bf16.msra.mxu1 %v3008_v1  ;;  %v1018_v23 = vsel %vm143_vm7, %v4481_v60, %v1017_v35  ;;  %2724 = vmatpush2.bf16.msra.mxu0 %v3078_v34  ;;  %v4978_v60 = vld [vmem:[#allocation23_spill] sm:$0xff]  ;;  %v1661_v50 = vsel %vm141_vm0, %v4980_v28, %v1645_v16  ;;  %v1521_v48 = vrot.slane %v4340_v30, 4  ;;  %v4982_v8 = vcombine.low %v4275_v42, %v4279_v5  ;;  %v4645_v5 = vpop.permute.xlu0 %1887 }
 0x308   :  { %v1657_v25 = vrot.slane %v4604_v63, 4  ;;  %2799 = vmatprep.subr.bf16.mxu1 %v4977_v11  ;;  %v1782_v38 = vrot.slane %v4978_v60, 4  ;;  %2725 = vmatprep.subr.bf16.mxu0 %v3073_v18  ;;  %v2997_v54 = vcombine.high %v1012_v21, %v1018_v23  ;;  %v1674_v36 = vsel %vm314_vm3, %v3925_v29, %v1673_v9  ;;  %v4989_v35 = vld [vmem:[#allocation27_spill] sm:$0xff]  ;;  %v4991_v18 = vld [vmem:[#allocation28_spill] sm:$0xff]  ;;  %v4993_v11 = vld [vmem:[#allocation41_spill] sm:$0xff] }
 0x309   :  { %v1668_v3 = vsel %vm314_vm3, %v3875_v14, %v1667_v0  ;;  %v1525_v32 = vrot.slane %v4505_v47, 4  ;;  %v1809_v44 = vsel %vm141_vm0, %v1785_v12, %v1786_v33  ;;  %v1517_v42 = vrot.slane %v4983_v26, 4 }
 0x30a   :  { %v1679_v13 = vsel %vm141_vm0, %v4981_v7, %v1657_v25  ;;  %v2996_v39 = vcombine.low %v1012_v21, %v1018_v23  ;;  %v1803_v29 = vsel %vm141_vm0, %v1781_v10, %v1782_v38  ;;  %v1662_v14 = vsel %vm314_vm3, %v3814_v57, %v1661_v50  ;;  %v4986_v10 = vld [vmem:[#allocation38_spill] sm:$0xff] }
 0x30b   :  { %v1642_v51 = vpop.permute.xlu1 %1641  ;;  %2800 = vmatpush1.bf16.msra.mxu1 %v4982_v8  ;;  %v1680_v56 = vsel %vm314_vm3, %v4059_v46, %v1679_v13  ;;  %2726 = vmatpush2.bf16.msra.mxu0 %v3072_v2  ;;  %v1810_v46 = vsel %vm347_vm2, %v4551_v52, %v1809_v44  ;;  %v1646_v12 = vrot.slane %v4569_v6, 4  ;;  %v3061_v41 = vcombine.high %v1662_v14, %v1668_v3  ;;  %v4988_v6 = vld [vmem:[#allocation33_spill] sm:$0xff]  ;;  %v4683_v21 = vpop.permute.xlu0 %1489 }
 0x30c   :  { %2801 = vmatprep.subr.bf16.mxu1 %v2997_v54  ;;  %v3066_v45 = vcombine.low %v1674_v36, %v1680_v56  ;;  %v3067_v62 = vcombine.high %v1674_v36, %v1680_v56  ;;  %v4985_v1 = vrot.slane %v4984_v58, 4  ;;  %v4987_v27 = vrot.slane %v4986_v10, 4 }
 0x30d   :  { %v1658_v20 = vrot.slane %v1642_v51, 4  ;;  %v4990_v17 = vcombine.high %v4988_v6, %v4989_v35  ;;  %v4992_v23 = vrot.slane %v4991_v18, 4  ;;  %v1804_v0 = vsel %vm347_vm2, %v4436_v24, %v1803_v29  ;;  %v1437_v29 = vld [vmem:[#allocation2 + $0x6c] sm:$0xff] }
 0x30e   :  { %2727 = vmatprep.subr.bf16.mxu0 %v3067_v62  ;;  %v1539_v34 = vsel %vm141_vm0, %v4985_v1, %v1521_v48  ;;  %v1545_v57 = vsel %vm141_vm0, %v4987_v27, %v1525_v32  ;;  %v1654_v55 = vrot.slane %v4534_v31, 4  ;;  %v3081_v9 = vcombine.high %v1804_v0, %v1810_v46 }
 0x30f   :  { %v4655_v61 = vpop.permute.xlu1 %1511  ;;  %2802 = vmatpush1.bf16.msra.mxu1 %v2996_v39  ;;  %2728 = vmatpush2.bf16.msra.mxu0 %v3066_v45  ;;  %v1533_v59 = vsel %vm141_vm0, %v4992_v23, %v1517_v42  ;;  %v4994_v60 = vrot.slane %v4993_v11, 4  ;;  %v3060_v19 = vcombine.low %v1662_v14, %v1668_v3  ;;  %v1663_v33 = vsel %vm141_vm0, %v1645_v16, %v1646_v12  ;;  %v1434_v39 = vld [vmem:[#allocation2 + $0x4c] sm:$0xff]  ;;  %v4712_v12 = vpop.permute.xlu0 %1871  ;;  %v4998_v23 = vld [vmem:[#allocation39_spill] sm:$0xff] }
 0x310   :  { %v1529_v52 = vrot.slane %v4655_v61, 4  ;;  %2803 = vmatprep.subr.bf16.mxu1 %v4990_v17  ;;  %2729 = vmatprep.subr.bf16.mxu0 %v3061_v41  ;;  %v4995_v50 = vcombine.low %v4988_v6, %v4989_v35  ;;  %v1546_v24 = vsel %vm281_vm4, %v4986_v10, %v1545_v57  ;;  %v1540_v7 = vsel %vm281_vm4, %v4984_v58, %v1539_v34 }
 0x311   :  { %v1681_v13 = vsel %vm141_vm0, %v1657_v25, %v1658_v20  ;;  %v3080_v51 = vcombine.low %v1804_v0, %v1810_v46  ;;  %v1675_v8 = vsel %vm141_vm0, %v1653_v49, %v1654_v55  ;;  %v1534_v56 = vsel %vm281_vm4, %v4991_v18, %v1533_v59  ;;  %v1431_v20 = vld [vmem:[#allocation2 + $0x2c] sm:$0xff] }
 0x312   :  { %v1551_v38 = vsel %vm141_vm0, %v4994_v60, %v1529_v52  ;;  %v3049_v25 = vcombine.high %v1534_v56, %v1540_v7  ;;  %v1682_v44 = vsel %vm314_vm3, %v4604_v63, %v1681_v13  ;;  %v1664_v45 = vsel %vm314_vm3, %v4202_v4, %v1663_v33  ;;  %v5000_v60 = vld [vmem:[#allocation42_spill] sm:$0xff] }
 0x313   :  { %v1626_v28 = vpop.permute.xlu1 %1625  ;;  %2804 = vmatpush1.bf16.msra.mxu1 %v4995_v50  ;;  %v1552_v31 = vsel %vm281_vm4, %v4993_v11, %v1551_v38  ;;  %2730 = vmatpush2.bf16.msra.mxu0 %v3060_v19  ;;  %v1676_v63 = vsel %vm314_vm3, %v4483_v53, %v1675_v8  ;;  %v1526_v4 = vrot.slane %v4602_v43, 4  ;;  %v3048_v41 = vcombine.low %v1534_v56, %v1540_v7 }
 0x314   :  { %v1650_v2 = vrot.slane %v1626_v28, 4  ;;  %2805 = vmatprep.subr.bf16.mxu1 %v3081_v9  ;;  %v3054_v16 = vcombine.low %v1546_v24, %v1552_v31  ;;  %v3055_v54 = vcombine.high %v1546_v24, %v1552_v31  ;;  %v4997_v1 = vcombine.low %v4407_v15, %v4411_v40  ;;  %v5002_v31 = vld [vmem:[#allocation29_spill] sm:$0xff] }
 0x315   :  { %v3043_v34 = vcombine.high %v1434_v39, %v1437_v29  ;;  %v1909_v10 = vrot.slane %v4645_v5, 4  ;;  %v3068_v53 = vcombine.low %v1676_v63, %v1682_v44  ;;  %v1547_v43 = vsel %vm141_vm0, %v1525_v32, %v1526_v4 }
 0x316   :  { %v1669_v36 = vsel %vm141_vm0, %v1649_v37, %v1650_v2  ;;  %2731 = vmatprep.subr.bf16.mxu0 %v3055_v54  ;;  %v4996_v37 = vcombine.high %v4407_v15, %v4411_v40  ;;  %v1518_v6 = vrot.slane %v4683_v21, 4  ;;  %v3042_v35 = vcombine.low %v1434_v39, %v1437_v29  ;;  %v1428_v15 = vld [vmem:[#allocation2 + $0xc] sm:$0xff]  ;;  %v1890_v40 = vpop.permute.xlu0 %1889 }
 0x317   :  { %v1514_v3 = vpop.permute.xlu1 %1513  ;;  %2806 = vmatpush2.bf16.msra.mxu1 %v3080_v51  ;;  %v1670_v49 = vsel %vm314_vm3, %v4319_v22, %v1669_v36  ;;  %2732 = vmatpush2.bf16.msra.mxu0 %v3054_v16  ;;  %v3069_v22 = vcombine.high %v1676_v63, %v1682_v44  ;;  %v3037_v18 = vcombine.high %v1428_v15, %v1431_v20  ;;  %v4999_v59 = vrot.slane %v4998_v23, 4  ;;  %v5004_v36 = vld [vmem:[#allocation35_spill] sm:$0xff]  ;;  %v5006_v44 = vld [vmem:[#allocation37_spill] sm:$0xff] }
 0x318   :  { %v1530_v62 = vrot.slane %v1514_v3, 4  ;;  %2807 = vmatprep.subr.bf16.mxu1 %v4996_v37  ;;  %v3062_v14 = vcombine.low %v1664_v45, %v1670_v49  ;;  %v3063_v46 = vcombine.high %v1664_v45, %v1670_v49  ;;  %2733 = vmatprep.subr.bf16.mxu0 %v3049_v25  ;;  %v1901_v55 = vrot.slane %v4712_v12, 4  ;;  %v1435_v37 = vld [vmem:[#allocation2 + $0x54] sm:$0xff] }
 0x319   :  { %v1929_v0 = vsel %vm141_vm0, %v4999_v59, %v1909_v10  ;;  %v1548_v11 = vsel %vm281_vm4, %v4505_v47, %v1547_v43  ;;  %v5001_v38 = vrot.slane %v5000_v60, 4  ;;  %v3036_v33 = vcombine.low %v1428_v15, %v1431_v20 }
 0x31a   :  { %v1553_v27 = vsel %vm141_vm0, %v1529_v52, %v1530_v62  ;;  %v1910_v28 = vrot.slane %v1890_v40, 4  ;;  %v1874_v54 = vpop.permute.xlu0 %1873  ;;  %v5005_v56 = vrot.slane %v5004_v36, 4  ;;  %v5007_v4 = vmov 0   ;;  %v5008_v40 = vld [vmem:[#allocation31_spill] sm:$0xff] }
 0x31b   :  { %v1498_v58 = vpop.permute.xlu1 %1497  ;;  %2808 = vmatpush2.bf16.msra.mxu1 %v4997_v1  ;;  %2734 = vmatpush2.bf16.msra.mxu0 %v3048_v41  ;;  %v1554_v52 = vsel %vm281_vm4, %v4655_v61, %v1553_v27  ;;  %v1535_v61 = vsel %vm141_vm0, %v1517_v42, %v1518_v6  ;;  %v5003_v42 = vrot.slane %v5002_v31, 4  ;;  %v1902_v39 = vrot.slane %v1874_v54, 4  ;;  %v1432_v27 = vld [vmem:[#allocation2 + $0x34] sm:$0xff] }
 0x31c   :  { %v1522_v57 = vrot.slane %v1498_v58, 4  ;;  %2809 = vmatprep.subr.bf16.mxu1 %v3069_v22  ;;  %2735 = vmatprep.subr.bf16.mxu0 %v3043_v34  ;;  %v3057_v21 = vcombine.high %v1548_v11, %v1554_v52  ;;  %v3056_v51 = vcombine.low %v1548_v11, %v1554_v52  ;;  %v1536_v8 = vsel %vm281_vm4, %v4983_v26, %v1535_v61  ;;  %v1438_v26 = vld [vmem:[#allocation2 + $0x74] sm:$0xff] }
 0x31d   :  { %v1917_v7 = vsel %vm141_vm0, %v5003_v42, %v1901_v55  ;;  %v1931_v25 = vsel %vm141_vm0, %v1909_v10, %v1910_v28  ;;  %v3045_v22 = vcombine.high %v1435_v37, %v1438_v26  ;;  %v1429_v10 = vld [vmem:[#allocation2 + $0x14] sm:$0xff]  ;;  %v3044_v6 = vcombine.low %v1435_v37, %v1438_v26 }
 0x31e   :  { %v1541_v32 = vsel %vm141_vm0, %v1521_v48, %v1522_v57  ;;  %v1930_v48 = vsel %vm380_vm1, %v4998_v23, %v1929_v0  ;;  %v1918_v49 = vsel %vm380_vm1, %v5002_v31, %v1917_v7  ;;  %v1932_v1 = vsel %vm380_vm1, %v4645_v5, %v1931_v25 }
 0x31f   :  { %v1896_v17 = vpop.permute.xlu1 %1895  ;;  %2810 = vmatpush2.bf16.msra.mxu1 %v3068_v53  ;;  %2736 = vmatpush2.bf16.msra.mxu0 %v3042_v35  ;;  %v1542_v47 = vsel %vm281_vm4, %v4340_v30, %v1541_v32  ;;  %v1919_v57 = vsel %vm141_vm0, %v1901_v55, %v1902_v39  ;;  %v3039_v15 = vcombine.high %v1429_v10, %v1432_v27 }
 0x320   :  { %v1913_v9 = vrot.slane %v1896_v17, 4  ;;  %2811 = vmatprep.subr.bf16.mxu1 %v3063_v46  ;;  %2737 = vmatprep.subr.bf16.mxu0 %v3037_v18  ;;  %v3051_v30 = vcombine.high %v1536_v8, %v1542_v47  ;;  %v3050_v63 = vcombine.low %v1536_v8, %v1542_v47  ;;  %v1920_v5 = vsel %vm380_vm1, %v4712_v12, %v1919_v57 }
 0x321   :  { %v3038_v23 = vcombine.low %v1429_v10, %v1432_v27 }
 0x322   :  { %v1935_v19 = vsel %vm141_vm0, %v5001_v38, %v1913_v9 }
 0x323   :  { %v1880_v50 = vpop.permute.xlu1 %1879  ;;  %2812 = vmatpush2.bf16.msra.mxu1 %v3062_v14  ;;  %v1936_v24 = vsel %vm380_vm1, %v5000_v60, %v1935_v19  ;;  %2738 = vmatpush2.bf16.msra.mxu0 %v3036_v33 }
 0x324   :  { %v1905_v13 = vrot.slane %v1880_v50, 4  ;;  %2813 = vmatprep.subr.bf16.mxu1 %v3057_v21  ;;  %v3090_v2 = vcombine.low %v1930_v48, %v1936_v24  ;;  %v3091_v16 = vcombine.high %v1930_v48, %v1936_v24 }
 0x326   :  { %v1923_v3 = vsel %vm141_vm0, %v5005_v56, %v1905_v13  ;;  %2760 = vmatprep.subr.bf16.mxu0 %v3091_v16  ;;  %2740 = vmatmul.mubr.bf16.vlgmr.msra.gmra.mxu0 %v5006_v44 }
 0x327   :  { %v1898_v45 = vpop.permute.xlu1 %1897  ;;  %2814 = vmatpush2.bf16.msra.mxu1 %v3056_v51  ;;  %v1924_v62 = vsel %vm380_vm1, %v5004_v36, %v1923_v3  ;;  %2761 = vmatpush1.bf16.msra.mxu0 %v3090_v2 }
 0x328   :  { %v1914_v29 = vrot.slane %v1898_v45, 4  ;;  %2815 = vmatprep.subr.bf16.mxu1 %v3051_v30  ;;  %v3084_v14 = vcombine.low %v1918_v49, %v1924_v62  ;;  %v3085_v46 = vcombine.high %v1918_v49, %v1924_v62  ;;  %2780 = vmatprep.mubr.bf16.mxu0 %v5007_v4 }
 0x32a   :  { %v1937_v41 = vsel %vm141_vm0, %v1913_v9, %v1914_v29  ;;  %2762 = vmatprep.subr.bf16.mxu0 %v3085_v46 }
 0x32b   :  { %v1882_v58 = vpop.permute.xlu1 %1881  ;;  %2816 = vmatpush2.bf16.msra.mxu1 %v3050_v63  ;;  %v1938_v34 = vsel %vm380_vm1, %v1896_v17, %v1937_v41  ;;  %2763 = vmatpush1.bf16.msra.mxu0 %v3084_v14 }
 0x32c   :  { %v1906_v20 = vrot.slane %v1882_v58, 4  ;;  %2817 = vmatprep.subr.bf16.mxu1 %v3045_v22  ;;  %v3092_v53 = vcombine.low %v1932_v1, %v1938_v34  ;;  %v3093_v43 = vcombine.high %v1932_v1, %v1938_v34 }
 0x32e   :  { %v1925_v35 = vsel %vm141_vm0, %v1905_v13, %v1906_v20  ;;  %2842 = vmatprep.subr.bf16.mxu0 %v3093_v43  ;;  %3095 = vmatmul.mubr.msk.bf16.vlgmr.msra.gmra.mxu0 %vm2621_vm10, %v5008_v40 }
 0x32f   :  { %2818 = vmatpush2.bf16.msra.mxu1 %v3044_v6  ;;  %v1926_v17 = vsel %vm380_vm1, %v1880_v50, %v1925_v35  ;;  %2843 = vmatpush1.bf16.msra.mxu0 %v3092_v53 }
 0x330   :  { %2819 = vmatprep.subr.bf16.mxu1 %v3039_v15  ;;  %v3086_v18 = vcombine.low %v1920_v5, %v1926_v17  ;;  %v3087_v52 = vcombine.high %v1920_v5, %v1926_v17  ;;  %2862 = vmatprep.mubr.bf16.mxu0 %v5007_v4 }
 0x332   :  { %2844 = vmatprep.subr.bf16.mxu0 %v3087_v52 }
 0x333   :  { %2820 = vmatpush2.bf16.msra.mxu1 %v3038_v23  ;;  %2845 = vmatpush1.bf16.msra.mxu0 %v3086_v18 }
 0x336   :  { %2822 = vmatmul.mubr.bf16.vlgmr.msra.gmra.mxu1 %v5006_v44  ;;  %3096 = vmatmul.mubr.msk.bf16.vlgmr.msra.gmra.mxu0 %vm2621_vm10, %v5008_v40 }
 0x39a   :  { %v2659_v59 = vpop.f32.mrf.mxu1 }
 0x39c   :  { %v2661_v0 = vpop.f32.mrf.mxu1 }
 0x39e   :  { %v2663_v12 = vpop.f32.mrf.mxu1 }
 0x3a0   :  { %v2664_v55 = vpop.f32.mrf.mxu1 }
 0x3a2   :  { %v2700_v32 = vpop.f32.mrf.mxu1 }
 0x3a3   :  { %v2701_v9 = vadd.f32 %v2700_v32, %v2659_v59 }
 0x3a4   :  { %v2702_v11 = vpop.f32.mrf.mxu1 }
 0x3a5   :  { %v2871_v61 = vmax.f32 %v2701_v9, 0.0  ;;  %v2703_v60 = vadd.f32 %v2702_v11, %v2661_v0 }
 0x3a6   :  { %v2704_v38 = vpop.f32.mrf.mxu1 }
 0x3a7   :  { %v2877_v33 = vsel %vm799_vm11, %v2871_v61, 0.0  ;;  %v2872_v21 = vmax.f32 %v2703_v60, 0.0 }
 0x3a8   :  { %v2705_v28 = vpop.f32.mrf.mxu1 }
 0x3a9   :  { %v2878_v48 = vsel %vm800_vm12, %v2872_v21, 0.0 }
 0x3aa   :  { %v3112_v24 = vpack.c.bf16 %v2878_v48, %v2877_v33 }
 0x3ac   :  { %2907 = vst [vmem:[#allocation12] sm:$0xff] %v3112_v24 }
 0x3e6   :  { %v2741_v47 = vpop.f32.mrf.mxu0 }
 0x3e8   :  { %v2743_v31 = vpop.f32.mrf.mxu0 }
 0x3ea   :  { %v2745_v42 = vpop.f32.mrf.mxu0 }
 0x3ec   :  { %v2746_v7 = vpop.f32.mrf.mxu0 }
 0x3ee   :  { %v2782_v13 = vpop.f32.mrf.mxu0 }
 0x3ef   :  { %v2783_v2 = vadd.f32 %v2782_v13, %v2741_v47 }
 0x3f0   :  { %v2784_v16 = vpop.f32.mrf.mxu0 }
 0x3f1   :  { %v2873_v54 = vmax.f32 %v2783_v2, 0.0  ;;  %v2785_v51 = vadd.f32 %v2784_v16, %v2743_v31 }
 0x3f2   :  { %v2786_v8 = vpop.f32.mrf.mxu0 }
 0x3f3   :  { %v2874_v36 = vmax.f32 %v2785_v51, 0.0  ;;  %v2879_v30 = vsel %vm801_vm13, %v2873_v54, 0.0 }
 0x3f4   :  { %v2787_v56 = vpop.f32.mrf.mxu0 }
 0x3f5   :  { %v2880_v44 = vsel %vm802_vm14, %v2874_v36, 0.0 }
 0x3f6   :  { %v2823_v45 = vpop.f32.mrf.mxu1  ;;  %v3113_v49 = vpack.c.bf16 %v2880_v44, %v2879_v30  ;;  %v2864_v62 = vpop.f32.mrf.mxu0 }
 0x3f7   :  { %v2865_v37 = vadd.f32 %v2864_v62, %v2823_v45 }
 0x3f8   :  { %v2825_v26 = vpop.f32.mrf.mxu1  ;;  %2908 = vst [vmem:[#allocation12 + $0x8] sm:$0xff] %v3113_v49  ;;  %v2866_v39 = vpop.f32.mrf.mxu0 }
 0x3f9   :  { %v2875_v29 = vmax.f32 %v2865_v37, 0.0  ;;  %v2867_v14 = vadd.f32 %v2866_v39, %v2825_v26 }
 0x3fa   :  { %v2827_v46 = vpop.f32.mrf.mxu1  ;;  %v2868_v63 = vpop.f32.mrf.mxu0 }
 0x3fb   :  { %v2876_v4 = vmax.f32 %v2867_v14, 0.0  ;;  %v2881_v1 = vsel %vm803_vm15, %v2875_v29, 0.0 }
 0x3fc   :  { %v2828_v41 = vpop.f32.mrf.mxu1  ;;  %v2869_v22 = vpop.f32.mrf.mxu0 }
 0x3fd   :  { %v2882_v10 = vsel %vm804_vm9, %v2876_v4, 0.0 }
 0x3fe   :  { %v3114_v27 = vpack.c.bf16 %v2882_v10, %v2881_v1 }
 0x400   :  { %2909 = vst [vmem:[#allocation12 + $0x10] sm:$0xff] %v3114_v27 }
 0x401   :  { %3228 = shalt.err (!%p3225_p10)
}
 0x402   :  { %2919 = dma.vmem_to_hbm [thread:$0]  %s2917_s16, 384, %s4798_s4, [#allocation6]  }
 0x403   :  { %3243 = dma.done.wait [#allocation6], 384  }
 0x404   :  { %3244 = vsyncadd [#allocation6], 4294966912 }
 0x405   :  { %2923 = vsyncpa [#allocation5], 1 }
 0x406   :  { %2924 = vsyncpa [#allocation8], 1 }
 0x407   :  { %2925 = vsyncpa [#allocation11], 1 }
 0x408   :  { %2926 = vsyncpa [#allocation6], 1 }

</bundles_post_ra>
